<compile_context>
chip_gen: v6e
topology: v6e:2x2x1
jax: 0.10.0
libtpu: 0.0.40
codegen_flags: <defaults>
</compile_context>

<pallas_src>
import math
from functools import partial

import jax
import jax.numpy as jnp
from jax.experimental import pallas as pl

# ---------------- model config (small, consistent with the forward pass) ----
HIDDEN = 64        # stands in for 768
N_HEADS = 2
HEAD_DIM = HIDDEN // N_HEADS
FFN = 128          # stands in for 3072
N_LAYERS = 2
VOCAB = 64
MAX_POS = 32
N_CLASSES = 7
NC_PAD = 128       # lane-dense padded classifier width
QKV_PAD = 256      # lane-dense padded fused-QKV width (3*HIDDEN = 192 -> 256)
SEQ = 8
BATCH = 2
LN_EPS = 1e-5
USE_CONTEXT = True
NEG_INF = -1e9


# ---------------------------- in-kernel helpers ------------------------------
def _layernorm(x, gamma, beta):
    x = x.astype(jnp.float32)
    mean = jnp.mean(x, axis=-1, keepdims=True)
    var = jnp.mean((x - mean) ** 2, axis=-1, keepdims=True)
    return (x - mean) * jax.lax.rsqrt(var + LN_EPS) * gamma + beta


# ------------------ single fused whole-model kernel --------------------------
def _model_kernel(x_ref, bias_ref, emb_g_ref, emb_b_ref,
                  wqkv_ref, bqkv_ref, wo_ref, bo_ref,
                  ln1_g_ref, ln1_b_ref, w1_ref, b1_ref,
                  w2_ref, b2_ref, ln2_g_ref, ln2_b_ref,
                  pool_w_ref, pool_b_ref, cls_w_ref, cls_b_ref,
                  h_ref, pool_ref, feat_ref, logit_ref,
                  *, n_total, n_main, use_context):
    # embedding LayerNorm
    x = _layernorm(x_ref[...], emb_g_ref[...], emb_b_ref[...])      # (Bc*S, H) f32
    bias = bias_ref[...]                 # (Bc*S, Bc*S) additive block-diag + key mask
    scale = 1.0 / math.sqrt(HEAD_DIM)

    # ---- transformer layers: static unroll, all weights VMEM-resident ------
    for l in range(N_LAYERS):
        # fused QKV projection (lane-padded to 256 output columns)
        qkv = (jnp.dot(x.astype(jnp.bfloat16), wqkv_ref[l],
                       preferred_element_type=jnp.float32) + bqkv_ref[l])

        # multi-head attention: whole flattened batch in one matmul per head,
        # cross-batch attention killed by the block-diagonal additive bias.
        heads = []
        for h in range(N_HEADS):
            c0 = h * HEAD_DIM
            q = qkv[:, c0:c0 + HEAD_DIM]
            k = qkv[:, HIDDEN + c0:HIDDEN + c0 + HEAD_DIM]
            v = qkv[:, 2 * HIDDEN + c0:2 * HIDDEN + c0 + HEAD_DIM]
            s = jnp.dot(q.astype(jnp.bfloat16), k.astype(jnp.bfloat16).T,
                        preferred_element_type=jnp.float32) * scale + bias
            s = s - jnp.max(s, axis=-1, keepdims=True)
            p = jnp.exp(s)
            p = p * pl.reciprocal(jnp.sum(p, axis=-1, keepdims=True), approx=True)
            heads.append(jnp.dot(p.astype(jnp.bfloat16), v.astype(jnp.bfloat16),
                                 preferred_element_type=jnp.float32))
        ctx = jnp.concatenate(heads, axis=-1)                        # (Bc*S, H)

        attn = (jnp.dot(ctx.astype(jnp.bfloat16), wo_ref[l],
                        preferred_element_type=jnp.float32) + bo_ref[l])
        x = _layernorm(attn + x, ln1_g_ref[l], ln1_b_ref[l])

        hmid = (jnp.dot(x.astype(jnp.bfloat16), w1_ref[l],
                        preferred_element_type=jnp.float32) + b1_ref[l])
        # TODO(synk): HF RoBERTa uses exact erf GELU; tanh approximation kept here.
        hmid = jax.nn.gelu(hmid)
        ffn = (jnp.dot(hmid.astype(jnp.bfloat16), w2_ref[l],
                       preferred_element_type=jnp.float32) + b2_ref[l])
        x = _layernorm(ffn + x, ln2_g_ref[l], ln2_b_ref[l])

    h_ref[...] = x                                                   # last_hidden_state

    # ---- pooler (+tanh) and classifier epilogue (fused, same kernel) -------
    cls = jnp.concatenate([x[b * SEQ:b * SEQ + 1, :] for b in range(n_total)],
                          axis=0)                                    # (Bc, H) CLS rows
    pooled = jnp.tanh(jnp.dot(cls.astype(jnp.bfloat16), pool_w_ref[...],
                              preferred_element_type=jnp.float32) + pool_b_ref[...])
    pool_ref[...] = pooled
    if use_context:
        feats = jnp.concatenate([pooled[:n_main], pooled[n_main:]], axis=1)
    else:
        feats = pooled
    feat_ref[...] = feats
    logit_ref[...] = (jnp.dot(feats.astype(jnp.bfloat16), cls_w_ref[...],
                              preferred_element_type=jnp.float32)
                      + cls_b_ref[...])                              # lane-dense (.,128)


# ---------------------------- parameter init --------------------------------
def init_params(key, use_context=USE_CONTEXT):
    def nrm(k, shape, scale=0.02, dtype=jnp.bfloat16):
        return (scale * jax.random.normal(k, shape)).astype(dtype)

    ks = iter(jax.random.split(key, 16))
    L, H = N_LAYERS, HIDDEN
    # fused QKV, lane-padded 3H=192 -> 256 (extra columns are zero)
    wqkv = jnp.zeros((L, H, QKV_PAD), jnp.float32)
    wqkv = wqkv.at[:, :, :3 * H].set(0.02 * jax.random.normal(next(ks), (L, H, 3 * H)))
    p = {
        "word_emb": (0.02 * jax.random.normal(next(ks), (VOCAB, H))).astype(jnp.float32),
        "pos_emb": (0.02 * jax.random.normal(next(ks), (MAX_POS, H))).astype(jnp.float32),
        "emb_ln_g": jnp.ones((1, H), jnp.float32),
        "emb_ln_b": jnp.zeros((1, H), jnp.float32),
        # per-layer weights stacked on a leading L axis (indexed statically in-kernel)
        "wqkv": wqkv.astype(jnp.bfloat16),
        "bqkv": jnp.zeros((L, 1, QKV_PAD), jnp.float32),
        "wo": nrm(next(ks), (L, H, H)),
        "bo": jnp.zeros((L, 1, H), jnp.float32),
        "ln1_g": jnp.ones((L, 1, H), jnp.float32),
        "ln1_b": jnp.zeros((L, 1, H), jnp.float32),
        "w1": nrm(next(ks), (L, H, FFN)),
        "b1": jnp.zeros((L, 1, FFN), jnp.float32),
        "w2": nrm(next(ks), (L, FFN, H)),
        "b2": jnp.zeros((L, 1, H), jnp.float32),
        "ln2_g": jnp.ones((L, 1, H), jnp.float32),
        "ln2_b": jnp.zeros((L, 1, H), jnp.float32),
        "pool_w": nrm(next(ks), (H, H)),
        "pool_b": jnp.zeros((1, H), jnp.float32),
    }
    cls_in = 2 * H if use_context else H
    cls_w = 0.02 * jax.random.normal(next(ks), (cls_in, N_CLASSES))
    # lane-dense padded classifier (real 7 classes live in columns [:N_CLASSES])
    cls_w_pad = jnp.zeros((cls_in, NC_PAD), jnp.float32).at[:, :N_CLASSES].set(cls_w)
    p["cls_w_pad"] = cls_w_pad.astype(jnp.bfloat16)
    p["cls_b_pad"] = jnp.zeros((1, NC_PAD), jnp.float32)
    return p


# ---------------------- TextEmotionClassifier.forward ------------------------
def text_emotion_classifier_forward(params, input_ids, attention_mask,
                                    context_input_ids=None,
                                    context_attention_mask=None,
                                    use_context=USE_CONTEXT):
    B, S = input_ids.shape
    if use_context:
        if context_input_ids is None or context_attention_mask is None:
            raise ValueError("Context inputs are required when use_context is True.")
        # main + context encoders share weights -> run as ONE batched pass
        ids = jnp.concatenate([input_ids, context_input_ids], axis=0)
        mask = jnp.concatenate([attention_mask, context_attention_mask], axis=0)
    else:
        ids, mask = input_ids, attention_mask
    Bc = ids.shape[0]
    rows = Bc * S

    # token + position embedding lookup (gather stays in XLA; no Pallas gather here)
    x = params["word_emb"][ids] + params["pos_emb"][:S][None, :, :]
    x2d = x.reshape(rows, HIDDEN).astype(jnp.float32)

    # block-diagonal additive attention bias over the flattened (Bc*S) axis:
    # 0 where query and key belong to the same batch element AND the key is
    # unmasked, -1e9 otherwise.  Lets the kernel run one score matmul per head
    # over the whole batch.
    row_b = jnp.repeat(jnp.arange(Bc), S)
    same_batch = row_b[:, None] == row_b[None, :]
    key_ok = mask.reshape(-1).astype(jnp.int32) > 0
    bias = jnp.where(same_batch & key_ok[None, :], 0.0, NEG_INF).astype(jnp.float32)

    n_main = B
    feat_dim = 2 * HIDDEN if use_context else HIDDEN
    out_shape = (
        jax.ShapeDtypeStruct((rows, HIDDEN), jnp.float32),      # last hidden states
        jax.ShapeDtypeStruct((Bc, HIDDEN), jnp.float32),        # all pooler outputs
        jax.ShapeDtypeStruct((n_main, feat_dim), jnp.float32),  # pooled features
        jax.ShapeDtypeStruct((n_main, NC_PAD), jnp.float32),    # padded logits
    )

    hidden2d, pooled_all, pooled_features, logits_pad = pl.pallas_call(
        partial(_model_kernel, n_total=Bc, n_main=n_main, use_context=use_context),
        out_shape=out_shape,
    )(x2d, bias,
      params["emb_ln_g"], params["emb_ln_b"],
      params["wqkv"], params["bqkv"], params["wo"], params["bo"],
      params["ln1_g"], params["ln1_b"], params["w1"], params["b1"],
      params["w2"], params["b2"], params["ln2_g"], params["ln2_b"],
      params["pool_w"], params["pool_b"], params["cls_w_pad"], params["cls_b_pad"])

    logits = logits_pad[:, :N_CLASSES]
    hidden_states = hidden2d.reshape(Bc, S, HIDDEN)[:B]
    context_pooler = pooled_all[B:] if use_context else None
    return logits, pooled_features, hidden_states, attention_mask, context_pooler


# ----------------------------------- main ------------------------------------
if __name__ == "__main__":
    key = jax.random.PRNGKey(0)
    k_param, k_ids, k_ctx = jax.random.split(key, 3)

    params = init_params(k_param)

    input_ids = jax.random.randint(k_ids, (BATCH, SEQ), 0, VOCAB, dtype=jnp.int32)
    attention_mask = jnp.ones((BATCH, SEQ), dtype=jnp.int32).at[1, SEQ - 2:].set(0)
    context_input_ids = jax.random.randint(k_ctx, (BATCH, SEQ), 0, VOCAB, dtype=jnp.int32)
    context_attention_mask = jnp.ones((BATCH, SEQ), dtype=jnp.int32)

    outs = text_emotion_classifier_forward(
        params, input_ids, attention_mask,
        context_input_ids, context_attention_mask)
    outs = jax.block_until_ready(outs)

    logits, pooled_features, hidden_states, attn_mask_out, context_pooler = outs
    assert logits.shape == (BATCH, N_CLASSES)
    assert pooled_features.shape == (BATCH, 2 * HIDDEN)
    assert hidden_states.shape == (BATCH, SEQ, HIDDEN)
    assert context_pooler.shape == (BATCH, HIDDEN)
    assert bool(jnp.all(jnp.isfinite(logits)))
    assert bool(jnp.all(jnp.isfinite(hidden_states)))
    print("KERNEL_OK")
</pallas_src>

<mosaic_0001>
module attributes {stable_mosaic.version = 11 : i64} {
  func.func @_model_kernel(%arg0: memref<32x64xf32, #tpu.memory_space<vmem>>, %arg1: memref<32x32xf32, #tpu.memory_space<vmem>>, %arg2: memref<1x64xf32, #tpu.memory_space<vmem>>, %arg3: memref<1x64xf32, #tpu.memory_space<vmem>>, %arg4: memref<2x64x256xbf16, #tpu.memory_space<vmem>>, %arg5: memref<2x1x256xf32, #tpu.memory_space<vmem>>, %arg6: memref<2x64x64xbf16, #tpu.memory_space<vmem>>, %arg7: memref<2x1x64xf32, #tpu.memory_space<vmem>>, %arg8: memref<2x1x64xf32, #tpu.memory_space<vmem>>, %arg9: memref<2x1x64xf32, #tpu.memory_space<vmem>>, %arg10: memref<2x64x128xbf16, #tpu.memory_space<vmem>>, %arg11: memref<2x1x128xf32, #tpu.memory_space<vmem>>, %arg12: memref<2x128x64xbf16, #tpu.memory_space<vmem>>, %arg13: memref<2x1x64xf32, #tpu.memory_space<vmem>>, %arg14: memref<2x1x64xf32, #tpu.memory_space<vmem>>, %arg15: memref<2x1x64xf32, #tpu.memory_space<vmem>>, %arg16: memref<64x64xbf16, #tpu.memory_space<vmem>>, %arg17: memref<1x64xf32, #tpu.memory_space<vmem>>, %arg18: memref<128x128xbf16, #tpu.memory_space<vmem>>, %arg19: memref<1x128xf32, #tpu.memory_space<vmem>>, %arg20: memref<32x64xf32, #tpu.memory_space<vmem>>, %arg21: memref<4x64xf32, #tpu.memory_space<vmem>>, %arg22: memref<2x128xf32, #tpu.memory_space<vmem>>, %arg23: memref<2x128xf32, #tpu.memory_space<vmem>>) attributes {dimension_semantics = [], scalar_prefetch = 0 : i64, scratch_operands = 0 : i64, tpu.core_type = #tpu.core_type<tc>} {
    %c0 = arith.constant 0 : index
    %c0_0 = arith.constant 0 : index
    %0 = vector.load %arg0[%c0, %c0_0] : memref<32x64xf32, #tpu.memory_space<vmem>>, vector<32x64xf32>
    %c0_1 = arith.constant 0 : index
    %c0_2 = arith.constant 0 : index
    %1 = vector.load %arg2[%c0_1, %c0_2] : memref<1x64xf32, #tpu.memory_space<vmem>>, vector<1x64xf32>
    %c0_3 = arith.constant 0 : index
    %c0_4 = arith.constant 0 : index
    %2 = vector.load %arg3[%c0_3, %c0_4] : memref<1x64xf32, #tpu.memory_space<vmem>>, vector<1x64xf32>
    %cst = arith.constant dense<0.000000e+00> : vector<32xf32>
    %3 = vector.multi_reduction <add>, %0, %cst [1] : vector<32x64xf32> to vector<32xf32>
    %4 = vector.shape_cast %3 : vector<32xf32> to vector<32x1xf32>
    %cst_5 = arith.constant 6.400000e+01 : f32
    %5 = vector.broadcast %cst_5 : f32 to vector<32x1xf32>
    %6 = arith.divf %4, %5 : vector<32x1xf32>
    %7 = vector.broadcast %6 : vector<32x1xf32> to vector<32x64xf32>
    %8 = arith.subf %0, %7 : vector<32x64xf32>
    %9 = arith.mulf %8, %8 : vector<32x64xf32>
    %cst_6 = arith.constant dense<0.000000e+00> : vector<32xf32>
    %10 = vector.multi_reduction <add>, %9, %cst_6 [1] : vector<32x64xf32> to vector<32xf32>
    %11 = vector.shape_cast %10 : vector<32xf32> to vector<32x1xf32>
    %cst_7 = arith.constant 6.400000e+01 : f32
    %12 = vector.broadcast %cst_7 : f32 to vector<32x1xf32>
    %13 = arith.divf %11, %12 : vector<32x1xf32>
    %14 = vector.broadcast %6 : vector<32x1xf32> to vector<32x64xf32>
    %15 = arith.subf %0, %14 : vector<32x64xf32>
    %cst_8 = arith.constant 9.99999974E-6 : f32
    %16 = vector.broadcast %cst_8 : f32 to vector<32x1xf32>
    %17 = arith.addf %13, %16 : vector<32x1xf32>
    %18 = math.rsqrt %17 : vector<32x1xf32>
    %19 = vector.broadcast %18 : vector<32x1xf32> to vector<32x64xf32>
    %20 = arith.mulf %15, %19 : vector<32x64xf32>
    %21 = vector.broadcast %1 : vector<1x64xf32> to vector<32x64xf32>
    %22 = arith.mulf %20, %21 : vector<32x64xf32>
    %23 = vector.broadcast %2 : vector<1x64xf32> to vector<32x64xf32>
    %24 = arith.addf %22, %23 : vector<32x64xf32>
    %c0_9 = arith.constant 0 : index
    %c0_10 = arith.constant 0 : index
    %25 = vector.load %arg1[%c0_9, %c0_10] : memref<32x32xf32, #tpu.memory_space<vmem>>, vector<32x32xf32>
    %26 = arith.truncf %24 : vector<32x64xf32> to vector<32x64xbf16>
    %c0_11 = arith.constant 0 : index
    %c0_12 = arith.constant 0 : index
    %c0_13 = arith.constant 0 : index
    %27 = vector.load %arg4[%c0_11, %c0_12, %c0_13] : memref<2x64x256xbf16, #tpu.memory_space<vmem>>, vector<1x64x256xbf16>
    %28 = vector.shape_cast %27 : vector<1x64x256xbf16> to vector<64x256xbf16>
    %cst_14 = arith.constant dense<0.000000e+00> : vector<32x256xf32>
    %29 = tpu.matmul %26, %28, %cst_14 {dimension_numbers = #tpu.dot_dimension_numbers<[1], [0], [0], [1], [0, 0, 1, 1], [], []>} : vector<32x64xbf16>, vector<64x256xbf16>, vector<32x256xf32> -> vector<32x256xf32>
    %c0_15 = arith.constant 0 : index
    %c0_16 = arith.constant 0 : index
    %c0_17 = arith.constant 0 : index
    %30 = vector.load %arg5[%c0_15, %c0_16, %c0_17] : memref<2x1x256xf32, #tpu.memory_space<vmem>>, vector<1x1x256xf32>
    %31 = vector.shape_cast %30 : vector<1x1x256xf32> to vector<1x256xf32>
    %32 = vector.broadcast %31 : vector<1x256xf32> to vector<32x256xf32>
    %33 = arith.addf %29, %32 : vector<32x256xf32>
    %34 = vector.extract_strided_slice %33 {offsets = [0, 0], sizes = [32, 32], strides = [1, 1]} : vector<32x256xf32> to vector<32x32xf32>
    %35 = vector.extract_strided_slice %33 {offsets = [0, 64], sizes = [32, 32], strides = [1, 1]} : vector<32x256xf32> to vector<32x32xf32>
    %36 = vector.extract_strided_slice %33 {offsets = [0, 128], sizes = [32, 32], strides = [1, 1]} : vector<32x256xf32> to vector<32x32xf32>
    %37 = arith.truncf %34 : vector<32x32xf32> to vector<32x32xbf16>
    %38 = arith.truncf %35 : vector<32x32xf32> to vector<32x32xbf16>
    %39 = tpu.transpose %38, [1, 0] : vector<32x32xbf16> -> vector<32x32xbf16>
    %cst_18 = arith.constant dense<0.000000e+00> : vector<32x32xf32>
    %40 = tpu.matmul %37, %39, %cst_18 {dimension_numbers = #tpu.dot_dimension_numbers<[1], [0], [0], [1], [0, 0, 1, 1], [], []>} : vector<32x32xbf16>, vector<32x32xbf16>, vector<32x32xf32> -> vector<32x32xf32>
    %cst_19 = arith.constant 0.176776692 : f32
    %41 = vector.broadcast %cst_19 : f32 to vector<32x32xf32>
    %42 = arith.mulf %40, %41 : vector<32x32xf32>
    %43 = arith.addf %42, %25 : vector<32x32xf32>
    %cst_20 = arith.constant dense<0xFF800000> : vector<32xf32>
    %44 = vector.multi_reduction <maximumf>, %43, %cst_20 [1] : vector<32x32xf32> to vector<32xf32>
    %45 = vector.shape_cast %44 : vector<32xf32> to vector<32x1xf32>
    %46 = vector.broadcast %45 : vector<32x1xf32> to vector<32x32xf32>
    %47 = arith.subf %43, %46 : vector<32x32xf32>
    %48 = math.exp %47 : vector<32x32xf32>
    %cst_21 = arith.constant dense<0.000000e+00> : vector<32xf32>
    %49 = vector.multi_reduction <add>, %48, %cst_21 [1] : vector<32x32xf32> to vector<32xf32>
    %50 = vector.shape_cast %49 : vector<32xf32> to vector<32x1xf32>
    %51 = tpu.reciprocal %50 {approx = true} : vector<32x1xf32> -> vector<32x1xf32>
    %52 = vector.broadcast %51 : vector<32x1xf32> to vector<32x32xf32>
    %53 = arith.mulf %48, %52 : vector<32x32xf32>
    %54 = arith.truncf %53 : vector<32x32xf32> to vector<32x32xbf16>
    %55 = arith.truncf %36 : vector<32x32xf32> to vector<32x32xbf16>
    %cst_22 = arith.constant dense<0.000000e+00> : vector<32x32xf32>
    %56 = tpu.matmul %54, %55, %cst_22 {dimension_numbers = #tpu.dot_dimension_numbers<[1], [0], [0], [1], [0, 0, 1, 1], [], []>} : vector<32x32xbf16>, vector<32x32xbf16>, vector<32x32xf32> -> vector<32x32xf32>
    %57 = vector.extract_strided_slice %33 {offsets = [0, 32], sizes = [32, 32], strides = [1, 1]} : vector<32x256xf32> to vector<32x32xf32>
    %58 = vector.extract_strided_slice %33 {offsets = [0, 96], sizes = [32, 32], strides = [1, 1]} : vector<32x256xf32> to vector<32x32xf32>
    %59 = vector.extract_strided_slice %33 {offsets = [0, 160], sizes = [32, 32], strides = [1, 1]} : vector<32x256xf32> to vector<32x32xf32>
    %60 = arith.truncf %57 : vector<32x32xf32> to vector<32x32xbf16>
    %61 = arith.truncf %58 : vector<32x32xf32> to vector<32x32xbf16>
    %62 = tpu.transpose %61, [1, 0] : vector<32x32xbf16> -> vector<32x32xbf16>
    %cst_23 = arith.constant dense<0.000000e+00> : vector<32x32xf32>
    %63 = tpu.matmul %60, %62, %cst_23 {dimension_numbers = #tpu.dot_dimension_numbers<[1], [0], [0], [1], [0, 0, 1, 1], [], []>} : vector<32x32xbf16>, vector<32x32xbf16>, vector<32x32xf32> -> vector<32x32xf32>
    %cst_24 = arith.constant 0.176776692 : f32
    %64 = vector.broadcast %cst_24 : f32 to vector<32x32xf32>
    %65 = arith.mulf %63, %64 : vector<32x32xf32>
    %66 = arith.addf %65, %25 : vector<32x32xf32>
    %cst_25 = arith.constant dense<0xFF800000> : vector<32xf32>
    %67 = vector.multi_reduction <maximumf>, %66, %cst_25 [1] : vector<32x32xf32> to vector<32xf32>
    %68 = vector.shape_cast %67 : vector<32xf32> to vector<32x1xf32>
    %69 = vector.broadcast %68 : vector<32x1xf32> to vector<32x32xf32>
    %70 = arith.subf %66, %69 : vector<32x32xf32>
    %71 = math.exp %70 : vector<32x32xf32>
    %cst_26 = arith.constant dense<0.000000e+00> : vector<32xf32>
    %72 = vector.multi_reduction <add>, %71, %cst_26 [1] : vector<32x32xf32> to vector<32xf32>
    %73 = vector.shape_cast %72 : vector<32xf32> to vector<32x1xf32>
    %74 = tpu.reciprocal %73 {approx = true} : vector<32x1xf32> -> vector<32x1xf32>
    %75 = vector.broadcast %74 : vector<32x1xf32> to vector<32x32xf32>
    %76 = arith.mulf %71, %75 : vector<32x32xf32>
    %77 = arith.truncf %76 : vector<32x32xf32> to vector<32x32xbf16>
    %78 = arith.truncf %59 : vector<32x32xf32> to vector<32x32xbf16>
    %cst_27 = arith.constant dense<0.000000e+00> : vector<32x32xf32>
    %79 = tpu.matmul %77, %78, %cst_27 {dimension_numbers = #tpu.dot_dimension_numbers<[1], [0], [0], [1], [0, 0, 1, 1], [], []>} : vector<32x32xbf16>, vector<32x32xbf16>, vector<32x32xf32> -> vector<32x32xf32>
    %80 = tpu.concatenate %56, %79 in 1 : vector<32x32xf32>, vector<32x32xf32> -> vector<32x64xf32>
    %81 = arith.truncf %80 : vector<32x64xf32> to vector<32x64xbf16>
    %c0_28 = arith.constant 0 : index
    %c0_29 = arith.constant 0 : index
    %c0_30 = arith.constant 0 : index
    %82 = vector.load %arg6[%c0_28, %c0_29, %c0_30] : memref<2x64x64xbf16, #tpu.memory_space<vmem>>, vector<1x64x64xbf16>
    %83 = vector.shape_cast %82 : vector<1x64x64xbf16> to vector<64x64xbf16>
    %cst_31 = arith.constant dense<0.000000e+00> : vector<32x64xf32>
    %84 = tpu.matmul %81, %83, %cst_31 {dimension_numbers = #tpu.dot_dimension_numbers<[1], [0], [0], [1], [0, 0, 1, 1], [], []>} : vector<32x64xbf16>, vector<64x64xbf16>, vector<32x64xf32> -> vector<32x64xf32>
    %c0_32 = arith.constant 0 : index
    %c0_33 = arith.constant 0 : index
    %c0_34 = arith.constant 0 : index
    %85 = vector.load %arg7[%c0_32, %c0_33, %c0_34] : memref<2x1x64xf32, #tpu.memory_space<vmem>>, vector<1x1x64xf32>
    %86 = vector.shape_cast %85 : vector<1x1x64xf32> to vector<1x64xf32>
    %87 = vector.broadcast %86 : vector<1x64xf32> to vector<32x64xf32>
    %88 = arith.addf %84, %87 : vector<32x64xf32>
    %89 = arith.addf %88, %24 : vector<32x64xf32>
    %c0_35 = arith.constant 0 : index
    %c0_36 = arith.constant 0 : index
    %c0_37 = arith.constant 0 : index
    %90 = vector.load %arg8[%c0_35, %c0_36, %c0_37] : memref<2x1x64xf32, #tpu.memory_space<vmem>>, vector<1x1x64xf32>
    %91 = vector.shape_cast %90 : vector<1x1x64xf32> to vector<1x64xf32>
    %c0_38 = arith.constant 0 : index
    %c0_39 = arith.constant 0 : index
    %c0_40 = arith.constant 0 : index
    %92 = vector.load %arg9[%c0_38, %c0_39, %c0_40] : memref<2x1x64xf32, #tpu.memory_space<vmem>>, vector<1x1x64xf32>
    %93 = vector.shape_cast %92 : vector<1x1x64xf32> to vector<1x64xf32>
    %cst_41 = arith.constant dense<0.000000e+00> : vector<32xf32>
    %94 = vector.multi_reduction <add>, %89, %cst_41 [1] : vector<32x64xf32> to vector<32xf32>
    %95 = vector.shape_cast %94 : vector<32xf32> to vector<32x1xf32>
    %cst_42 = arith.constant 6.400000e+01 : f32
    %96 = vector.broadcast %cst_42 : f32 to vector<32x1xf32>
    %97 = arith.divf %95, %96 : vector<32x1xf32>
    %98 = vector.broadcast %97 : vector<32x1xf32> to vector<32x64xf32>
    %99 = arith.subf %89, %98 : vector<32x64xf32>
    %100 = arith.mulf %99, %99 : vector<32x64xf32>
    %cst_43 = arith.constant dense<0.000000e+00> : vector<32xf32>
    %101 = vector.multi_reduction <add>, %100, %cst_43 [1] : vector<32x64xf32> to vector<32xf32>
    %102 = vector.shape_cast %101 : vector<32xf32> to vector<32x1xf32>
    %cst_44 = arith.constant 6.400000e+01 : f32
    %103 = vector.broadcast %cst_44 : f32 to vector<32x1xf32>
    %104 = arith.divf %102, %103 : vector<32x1xf32>
    %105 = vector.broadcast %97 : vector<32x1xf32> to vector<32x64xf32>
    %106 = arith.subf %89, %105 : vector<32x64xf32>
    %cst_45 = arith.constant 9.99999974E-6 : f32
    %107 = vector.broadcast %cst_45 : f32 to vector<32x1xf32>
    %108 = arith.addf %104, %107 : vector<32x1xf32>
    %109 = math.rsqrt %108 : vector<32x1xf32>
    %110 = vector.broadcast %109 : vector<32x1xf32> to vector<32x64xf32>
    %111 = arith.mulf %106, %110 : vector<32x64xf32>
    %112 = vector.broadcast %91 : vector<1x64xf32> to vector<32x64xf32>
    %113 = arith.mulf %111, %112 : vector<32x64xf32>
    %114 = vector.broadcast %93 : vector<1x64xf32> to vector<32x64xf32>
    %115 = arith.addf %113, %114 : vector<32x64xf32>
    %116 = arith.truncf %115 : vector<32x64xf32> to vector<32x64xbf16>
    %c0_46 = arith.constant 0 : index
    %c0_47 = arith.constant 0 : index
    %c0_48 = arith.constant 0 : index
    %117 = vector.load %arg10[%c0_46, %c0_47, %c0_48] : memref<2x64x128xbf16, #tpu.memory_space<vmem>>, vector<1x64x128xbf16>
    %118 = vector.shape_cast %117 : vector<1x64x128xbf16> to vector<64x128xbf16>
    %cst_49 = arith.constant dense<0.000000e+00> : vector<32x128xf32>
    %119 = tpu.matmul %116, %118, %cst_49 {dimension_numbers = #tpu.dot_dimension_numbers<[1], [0], [0], [1], [0, 0, 1, 1], [], []>} : vector<32x64xbf16>, vector<64x128xbf16>, vector<32x128xf32> -> vector<32x128xf32>
    %c0_50 = arith.constant 0 : index
    %c0_51 = arith.constant 0 : index
    %c0_52 = arith.constant 0 : index
    %120 = vector.load %arg11[%c0_50, %c0_51, %c0_52] : memref<2x1x128xf32, #tpu.memory_space<vmem>>, vector<1x1x128xf32>
    %121 = vector.shape_cast %120 : vector<1x1x128xf32> to vector<1x128xf32>
    %122 = vector.broadcast %121 : vector<1x128xf32> to vector<32x128xf32>
    %123 = arith.addf %119, %122 : vector<32x128xf32>
    %124 = arith.mulf %123, %123 : vector<32x128xf32>
    %125 = arith.mulf %123, %124 : vector<32x128xf32>
    %cst_53 = arith.constant 4.471500e-02 : f32
    %126 = vector.broadcast %cst_53 : f32 to vector<32x128xf32>
    %127 = arith.mulf %126, %125 : vector<32x128xf32>
    %128 = arith.addf %123, %127 : vector<32x128xf32>
    %cst_54 = arith.constant 0.797884583 : f32
    %129 = vector.broadcast %cst_54 : f32 to vector<32x128xf32>
    %130 = arith.mulf %129, %128 : vector<32x128xf32>
    %131 = math.tanh %130 : vector<32x128xf32>
    %cst_55 = arith.constant 1.000000e+00 : f32
    %132 = vector.broadcast %cst_55 : f32 to vector<32x128xf32>
    %133 = arith.addf %132, %131 : vector<32x128xf32>
    %cst_56 = arith.constant 5.000000e-01 : f32
    %134 = vector.broadcast %cst_56 : f32 to vector<32x128xf32>
    %135 = arith.mulf %134, %133 : vector<32x128xf32>
    %136 = arith.mulf %123, %135 : vector<32x128xf32>
    %137 = arith.truncf %136 : vector<32x128xf32> to vector<32x128xbf16>
    %c0_57 = arith.constant 0 : index
    %c0_58 = arith.constant 0 : index
    %c0_59 = arith.constant 0 : index
    %138 = vector.load %arg12[%c0_57, %c0_58, %c0_59] : memref<2x128x64xbf16, #tpu.memory_space<vmem>>, vector<1x128x64xbf16>
    %139 = vector.shape_cast %138 : vector<1x128x64xbf16> to vector<128x64xbf16>
    %cst_60 = arith.constant dense<0.000000e+00> : vector<32x64xf32>
    %140 = tpu.matmul %137, %139, %cst_60 {dimension_numbers = #tpu.dot_dimension_numbers<[1], [0], [0], [1], [0, 0, 1, 1], [], []>} : vector<32x128xbf16>, vector<128x64xbf16>, vector<32x64xf32> -> vector<32x64xf32>
    %c0_61 = arith.constant 0 : index
    %c0_62 = arith.constant 0 : index
    %c0_63 = arith.constant 0 : index
    %141 = vector.load %arg13[%c0_61, %c0_62, %c0_63] : memref<2x1x64xf32, #tpu.memory_space<vmem>>, vector<1x1x64xf32>
    %142 = vector.shape_cast %141 : vector<1x1x64xf32> to vector<1x64xf32>
    %143 = vector.broadcast %142 : vector<1x64xf32> to vector<32x64xf32>
    %144 = arith.addf %140, %143 : vector<32x64xf32>
    %145 = arith.addf %144, %115 : vector<32x64xf32>
    %c0_64 = arith.constant 0 : index
    %c0_65 = arith.constant 0 : index
    %c0_66 = arith.constant 0 : index
    %146 = vector.load %arg14[%c0_64, %c0_65, %c0_66] : memref<2x1x64xf32, #tpu.memory_space<vmem>>, vector<1x1x64xf32>
    %147 = vector.shape_cast %146 : vector<1x1x64xf32> to vector<1x64xf32>
    %c0_67 = arith.constant 0 : index
    %c0_68 = arith.constant 0 : index
    %c0_69 = arith.constant 0 : index
    %148 = vector.load %arg15[%c0_67, %c0_68, %c0_69] : memref<2x1x64xf32, #tpu.memory_space<vmem>>, vector<1x1x64xf32>
    %149 = vector.shape_cast %148 : vector<1x1x64xf32> to vector<1x64xf32>
    %cst_70 = arith.constant dense<0.000000e+00> : vector<32xf32>
    %150 = vector.multi_reduction <add>, %145, %cst_70 [1] : vector<32x64xf32> to vector<32xf32>
    %151 = vector.shape_cast %150 : vector<32xf32> to vector<32x1xf32>
    %cst_71 = arith.constant 6.400000e+01 : f32
    %152 = vector.broadcast %cst_71 : f32 to vector<32x1xf32>
    %153 = arith.divf %151, %152 : vector<32x1xf32>
    %154 = vector.broadcast %153 : vector<32x1xf32> to vector<32x64xf32>
    %155 = arith.subf %145, %154 : vector<32x64xf32>
    %156 = arith.mulf %155, %155 : vector<32x64xf32>
    %cst_72 = arith.constant dense<0.000000e+00> : vector<32xf32>
    %157 = vector.multi_reduction <add>, %156, %cst_72 [1] : vector<32x64xf32> to vector<32xf32>
    %158 = vector.shape_cast %157 : vector<32xf32> to vector<32x1xf32>
    %cst_73 = arith.constant 6.400000e+01 : f32
    %159 = vector.broadcast %cst_73 : f32 to vector<32x1xf32>
    %160 = arith.divf %158, %159 : vector<32x1xf32>
    %161 = vector.broadcast %153 : vector<32x1xf32> to vector<32x64xf32>
    %162 = arith.subf %145, %161 : vector<32x64xf32>
    %cst_74 = arith.constant 9.99999974E-6 : f32
    %163 = vector.broadcast %cst_74 : f32 to vector<32x1xf32>
    %164 = arith.addf %160, %163 : vector<32x1xf32>
    %165 = math.rsqrt %164 : vector<32x1xf32>
    %166 = vector.broadcast %165 : vector<32x1xf32> to vector<32x64xf32>
    %167 = arith.mulf %162, %166 : vector<32x64xf32>
    %168 = vector.broadcast %147 : vector<1x64xf32> to vector<32x64xf32>
    %169 = arith.mulf %167, %168 : vector<32x64xf32>
    %170 = vector.broadcast %149 : vector<1x64xf32> to vector<32x64xf32>
    %171 = arith.addf %169, %170 : vector<32x64xf32>
    %172 = arith.truncf %171 : vector<32x64xf32> to vector<32x64xbf16>
    %c1 = arith.constant 1 : index
    %c0_75 = arith.constant 0 : index
    %c0_76 = arith.constant 0 : index
    %173 = vector.load %arg4[%c1, %c0_75, %c0_76] : memref<2x64x256xbf16, #tpu.memory_space<vmem>>, vector<1x64x256xbf16>
    %174 = vector.shape_cast %173 : vector<1x64x256xbf16> to vector<64x256xbf16>
    %cst_77 = arith.constant dense<0.000000e+00> : vector<32x256xf32>
    %175 = tpu.matmul %172, %174, %cst_77 {dimension_numbers = #tpu.dot_dimension_numbers<[1], [0], [0], [1], [0, 0, 1, 1], [], []>} : vector<32x64xbf16>, vector<64x256xbf16>, vector<32x256xf32> -> vector<32x256xf32>
    %c1_78 = arith.constant 1 : index
    %c0_79 = arith.constant 0 : index
    %c0_80 = arith.constant 0 : index
    %176 = vector.load %arg5[%c1_78, %c0_79, %c0_80] : memref<2x1x256xf32, #tpu.memory_space<vmem>>, vector<1x1x256xf32>
    %177 = vector.shape_cast %176 : vector<1x1x256xf32> to vector<1x256xf32>
    %178 = vector.broadcast %177 : vector<1x256xf32> to vector<32x256xf32>
    %179 = arith.addf %175, %178 : vector<32x256xf32>
    %180 = vector.extract_strided_slice %179 {offsets = [0, 0], sizes = [32, 32], strides = [1, 1]} : vector<32x256xf32> to vector<32x32xf32>
    %181 = vector.extract_strided_slice %179 {offsets = [0, 64], sizes = [32, 32], strides = [1, 1]} : vector<32x256xf32> to vector<32x32xf32>
    %182 = vector.extract_strided_slice %179 {offsets = [0, 128], sizes = [32, 32], strides = [1, 1]} : vector<32x256xf32> to vector<32x32xf32>
    %183 = arith.truncf %180 : vector<32x32xf32> to vector<32x32xbf16>
    %184 = arith.truncf %181 : vector<32x32xf32> to vector<32x32xbf16>
    %185 = tpu.transpose %184, [1, 0] : vector<32x32xbf16> -> vector<32x32xbf16>
    %cst_81 = arith.constant dense<0.000000e+00> : vector<32x32xf32>
    %186 = tpu.matmul %183, %185, %cst_81 {dimension_numbers = #tpu.dot_dimension_numbers<[1], [0], [0], [1], [0, 0, 1, 1], [], []>} : vector<32x32xbf16>, vector<32x32xbf16>, vector<32x32xf32> -> vector<32x32xf32>
    %cst_82 = arith.constant 0.176776692 : f32
    %187 = vector.broadcast %cst_82 : f32 to vector<32x32xf32>
    %188 = arith.mulf %186, %187 : vector<32x32xf32>
    %189 = arith.addf %188, %25 : vector<32x32xf32>
    %cst_83 = arith.constant dense<0xFF800000> : vector<32xf32>
    %190 = vector.multi_reduction <maximumf>, %189, %cst_83 [1] : vector<32x32xf32> to vector<32xf32>
    %191 = vector.shape_cast %190 : vector<32xf32> to vector<32x1xf32>
    %192 = vector.broadcast %191 : vector<32x1xf32> to vector<32x32xf32>
    %193 = arith.subf %189, %192 : vector<32x32xf32>
    %194 = math.exp %193 : vector<32x32xf32>
    %cst_84 = arith.constant dense<0.000000e+00> : vector<32xf32>
    %195 = vector.multi_reduction <add>, %194, %cst_84 [1] : vector<32x32xf32> to vector<32xf32>
    %196 = vector.shape_cast %195 : vector<32xf32> to vector<32x1xf32>
    %197 = tpu.reciprocal %196 {approx = true} : vector<32x1xf32> -> vector<32x1xf32>
    %198 = vector.broadcast %197 : vector<32x1xf32> to vector<32x32xf32>
    %199 = arith.mulf %194, %198 : vector<32x32xf32>
    %200 = arith.truncf %199 : vector<32x32xf32> to vector<32x32xbf16>
    %201 = arith.truncf %182 : vector<32x32xf32> to vector<32x32xbf16>
    %cst_85 = arith.constant dense<0.000000e+00> : vector<32x32xf32>
    %202 = tpu.matmul %200, %201, %cst_85 {dimension_numbers = #tpu.dot_dimension_numbers<[1], [0], [0], [1], [0, 0, 1, 1], [], []>} : vector<32x32xbf16>, vector<32x32xbf16>, vector<32x32xf32> -> vector<32x32xf32>
    %203 = vector.extract_strided_slice %179 {offsets = [0, 32], sizes = [32, 32], strides = [1, 1]} : vector<32x256xf32> to vector<32x32xf32>
    %204 = vector.extract_strided_slice %179 {offsets = [0, 96], sizes = [32, 32], strides = [1, 1]} : vector<32x256xf32> to vector<32x32xf32>
    %205 = vector.extract_strided_slice %179 {offsets = [0, 160], sizes = [32, 32], strides = [1, 1]} : vector<32x256xf32> to vector<32x32xf32>
    %206 = arith.truncf %203 : vector<32x32xf32> to vector<32x32xbf16>
    %207 = arith.truncf %204 : vector<32x32xf32> to vector<32x32xbf16>
    %208 = tpu.transpose %207, [1, 0] : vector<32x32xbf16> -> vector<32x32xbf16>
    %cst_86 = arith.constant dense<0.000000e+00> : vector<32x32xf32>
    %209 = tpu.matmul %206, %208, %cst_86 {dimension_numbers = #tpu.dot_dimension_numbers<[1], [0], [0], [1], [0, 0, 1, 1], [], []>} : vector<32x32xbf16>, vector<32x32xbf16>, vector<32x32xf32> -> vector<32x32xf32>
    %cst_87 = arith.constant 0.176776692 : f32
    %210 = vector.broadcast %cst_87 : f32 to vector<32x32xf32>
    %211 = arith.mulf %209, %210 : vector<32x32xf32>
    %212 = arith.addf %211, %25 : vector<32x32xf32>
    %cst_88 = arith.constant dense<0xFF800000> : vector<32xf32>
    %213 = vector.multi_reduction <maximumf>, %212, %cst_88 [1] : vector<32x32xf32> to vector<32xf32>
    %214 = vector.shape_cast %213 : vector<32xf32> to vector<32x1xf32>
    %215 = vector.broadcast %214 : vector<32x1xf32> to vector<32x32xf32>
    %216 = arith.subf %212, %215 : vector<32x32xf32>
    %217 = math.exp %216 : vector<32x32xf32>
    %cst_89 = arith.constant dense<0.000000e+00> : vector<32xf32>
    %218 = vector.multi_reduction <add>, %217, %cst_89 [1] : vector<32x32xf32> to vector<32xf32>
    %219 = vector.shape_cast %218 : vector<32xf32> to vector<32x1xf32>
    %220 = tpu.reciprocal %219 {approx = true} : vector<32x1xf32> -> vector<32x1xf32>
    %221 = vector.broadcast %220 : vector<32x1xf32> to vector<32x32xf32>
    %222 = arith.mulf %217, %221 : vector<32x32xf32>
    %223 = arith.truncf %222 : vector<32x32xf32> to vector<32x32xbf16>
    %224 = arith.truncf %205 : vector<32x32xf32> to vector<32x32xbf16>
    %cst_90 = arith.constant dense<0.000000e+00> : vector<32x32xf32>
    %225 = tpu.matmul %223, %224, %cst_90 {dimension_numbers = #tpu.dot_dimension_numbers<[1], [0], [0], [1], [0, 0, 1, 1], [], []>} : vector<32x32xbf16>, vector<32x32xbf16>, vector<32x32xf32> -> vector<32x32xf32>
    %226 = tpu.concatenate %202, %225 in 1 : vector<32x32xf32>, vector<32x32xf32> -> vector<32x64xf32>
    %227 = arith.truncf %226 : vector<32x64xf32> to vector<32x64xbf16>
    %c1_91 = arith.constant 1 : index
    %c0_92 = arith.constant 0 : index
    %c0_93 = arith.constant 0 : index
    %228 = vector.load %arg6[%c1_91, %c0_92, %c0_93] : memref<2x64x64xbf16, #tpu.memory_space<vmem>>, vector<1x64x64xbf16>
    %229 = vector.shape_cast %228 : vector<1x64x64xbf16> to vector<64x64xbf16>
    %cst_94 = arith.constant dense<0.000000e+00> : vector<32x64xf32>
    %230 = tpu.matmul %227, %229, %cst_94 {dimension_numbers = #tpu.dot_dimension_numbers<[1], [0], [0], [1], [0, 0, 1, 1], [], []>} : vector<32x64xbf16>, vector<64x64xbf16>, vector<32x64xf32> -> vector<32x64xf32>
    %c1_95 = arith.constant 1 : index
    %c0_96 = arith.constant 0 : index
    %c0_97 = arith.constant 0 : index
    %231 = vector.load %arg7[%c1_95, %c0_96, %c0_97] : memref<2x1x64xf32, #tpu.memory_space<vmem>>, vector<1x1x64xf32>
    %232 = vector.shape_cast %231 : vector<1x1x64xf32> to vector<1x64xf32>
    %233 = vector.broadcast %232 : vector<1x64xf32> to vector<32x64xf32>
    %234 = arith.addf %230, %233 : vector<32x64xf32>
    %235 = arith.addf %234, %171 : vector<32x64xf32>
    %c1_98 = arith.constant 1 : index
    %c0_99 = arith.constant 0 : index
    %c0_100 = arith.constant 0 : index
    %236 = vector.load %arg8[%c1_98, %c0_99, %c0_100] : memref<2x1x64xf32, #tpu.memory_space<vmem>>, vector<1x1x64xf32>
    %237 = vector.shape_cast %236 : vector<1x1x64xf32> to vector<1x64xf32>
    %c1_101 = arith.constant 1 : index
    %c0_102 = arith.constant 0 : index
    %c0_103 = arith.constant 0 : index
    %238 = vector.load %arg9[%c1_101, %c0_102, %c0_103] : memref<2x1x64xf32, #tpu.memory_space<vmem>>, vector<1x1x64xf32>
    %239 = vector.shape_cast %238 : vector<1x1x64xf32> to vector<1x64xf32>
    %cst_104 = arith.constant dense<0.000000e+00> : vector<32xf32>
    %240 = vector.multi_reduction <add>, %235, %cst_104 [1] : vector<32x64xf32> to vector<32xf32>
    %241 = vector.shape_cast %240 : vector<32xf32> to vector<32x1xf32>
    %cst_105 = arith.constant 6.400000e+01 : f32
    %242 = vector.broadcast %cst_105 : f32 to vector<32x1xf32>
    %243 = arith.divf %241, %242 : vector<32x1xf32>
    %244 = vector.broadcast %243 : vector<32x1xf32> to vector<32x64xf32>
    %245 = arith.subf %235, %244 : vector<32x64xf32>
    %246 = arith.mulf %245, %245 : vector<32x64xf32>
    %cst_106 = arith.constant dense<0.000000e+00> : vector<32xf32>
    %247 = vector.multi_reduction <add>, %246, %cst_106 [1] : vector<32x64xf32> to vector<32xf32>
    %248 = vector.shape_cast %247 : vector<32xf32> to vector<32x1xf32>
    %cst_107 = arith.constant 6.400000e+01 : f32
    %249 = vector.broadcast %cst_107 : f32 to vector<32x1xf32>
    %250 = arith.divf %248, %249 : vector<32x1xf32>
    %251 = vector.broadcast %243 : vector<32x1xf32> to vector<32x64xf32>
    %252 = arith.subf %235, %251 : vector<32x64xf32>
    %cst_108 = arith.constant 9.99999974E-6 : f32
    %253 = vector.broadcast %cst_108 : f32 to vector<32x1xf32>
    %254 = arith.addf %250, %253 : vector<32x1xf32>
    %255 = math.rsqrt %254 : vector<32x1xf32>
    %256 = vector.broadcast %255 : vector<32x1xf32> to vector<32x64xf32>
    %257 = arith.mulf %252, %256 : vector<32x64xf32>
    %258 = vector.broadcast %237 : vector<1x64xf32> to vector<32x64xf32>
    %259 = arith.mulf %257, %258 : vector<32x64xf32>
    %260 = vector.broadcast %239 : vector<1x64xf32> to vector<32x64xf32>
    %261 = arith.addf %259, %260 : vector<32x64xf32>
    %262 = arith.truncf %261 : vector<32x64xf32> to vector<32x64xbf16>
    %c1_109 = arith.constant 1 : index
    %c0_110 = arith.constant 0 : index
    %c0_111 = arith.constant 0 : index
    %263 = vector.load %arg10[%c1_109, %c0_110, %c0_111] : memref<2x64x128xbf16, #tpu.memory_space<vmem>>, vector<1x64x128xbf16>
    %264 = vector.shape_cast %263 : vector<1x64x128xbf16> to vector<64x128xbf16>
    %cst_112 = arith.constant dense<0.000000e+00> : vector<32x128xf32>
    %265 = tpu.matmul %262, %264, %cst_112 {dimension_numbers = #tpu.dot_dimension_numbers<[1], [0], [0], [1], [0, 0, 1, 1], [], []>} : vector<32x64xbf16>, vector<64x128xbf16>, vector<32x128xf32> -> vector<32x128xf32>
    %c1_113 = arith.constant 1 : index
    %c0_114 = arith.constant 0 : index
    %c0_115 = arith.constant 0 : index
    %266 = vector.load %arg11[%c1_113, %c0_114, %c0_115] : memref<2x1x128xf32, #tpu.memory_space<vmem>>, vector<1x1x128xf32>
    %267 = vector.shape_cast %266 : vector<1x1x128xf32> to vector<1x128xf32>
    %268 = vector.broadcast %267 : vector<1x128xf32> to vector<32x128xf32>
    %269 = arith.addf %265, %268 : vector<32x128xf32>
    %270 = arith.mulf %269, %269 : vector<32x128xf32>
    %271 = arith.mulf %269, %270 : vector<32x128xf32>
    %cst_116 = arith.constant 4.471500e-02 : f32
    %272 = vector.broadcast %cst_116 : f32 to vector<32x128xf32>
    %273 = arith.mulf %272, %271 : vector<32x128xf32>
    %274 = arith.addf %269, %273 : vector<32x128xf32>
    %cst_117 = arith.constant 0.797884583 : f32
    %275 = vector.broadcast %cst_117 : f32 to vector<32x128xf32>
    %276 = arith.mulf %275, %274 : vector<32x128xf32>
    %277 = math.tanh %276 : vector<32x128xf32>
    %cst_118 = arith.constant 1.000000e+00 : f32
    %278 = vector.broadcast %cst_118 : f32 to vector<32x128xf32>
    %279 = arith.addf %278, %277 : vector<32x128xf32>
    %cst_119 = arith.constant 5.000000e-01 : f32
    %280 = vector.broadcast %cst_119 : f32 to vector<32x128xf32>
    %281 = arith.mulf %280, %279 : vector<32x128xf32>
    %282 = arith.mulf %269, %281 : vector<32x128xf32>
    %283 = arith.truncf %282 : vector<32x128xf32> to vector<32x128xbf16>
    %c1_120 = arith.constant 1 : index
    %c0_121 = arith.constant 0 : index
    %c0_122 = arith.constant 0 : index
    %284 = vector.load %arg12[%c1_120, %c0_121, %c0_122] : memref<2x128x64xbf16, #tpu.memory_space<vmem>>, vector<1x128x64xbf16>
    %285 = vector.shape_cast %284 : vector<1x128x64xbf16> to vector<128x64xbf16>
    %cst_123 = arith.constant dense<0.000000e+00> : vector<32x64xf32>
    %286 = tpu.matmul %283, %285, %cst_123 {dimension_numbers = #tpu.dot_dimension_numbers<[1], [0], [0], [1], [0, 0, 1, 1], [], []>} : vector<32x128xbf16>, vector<128x64xbf16>, vector<32x64xf32> -> vector<32x64xf32>
    %c1_124 = arith.constant 1 : index
    %c0_125 = arith.constant 0 : index
    %c0_126 = arith.constant 0 : index
    %287 = vector.load %arg13[%c1_124, %c0_125, %c0_126] : memref<2x1x64xf32, #tpu.memory_space<vmem>>, vector<1x1x64xf32>
    %288 = vector.shape_cast %287 : vector<1x1x64xf32> to vector<1x64xf32>
    %289 = vector.broadcast %288 : vector<1x64xf32> to vector<32x64xf32>
    %290 = arith.addf %286, %289 : vector<32x64xf32>
    %291 = arith.addf %290, %261 : vector<32x64xf32>
    %c1_127 = arith.constant 1 : index
    %c0_128 = arith.constant 0 : index
    %c0_129 = arith.constant 0 : index
    %292 = vector.load %arg14[%c1_127, %c0_128, %c0_129] : memref<2x1x64xf32, #tpu.memory_space<vmem>>, vector<1x1x64xf32>
    %293 = vector.shape_cast %292 : vector<1x1x64xf32> to vector<1x64xf32>
    %c1_130 = arith.constant 1 : index
    %c0_131 = arith.constant 0 : index
    %c0_132 = arith.constant 0 : index
    %294 = vector.load %arg15[%c1_130, %c0_131, %c0_132] : memref<2x1x64xf32, #tpu.memory_space<vmem>>, vector<1x1x64xf32>
    %295 = vector.shape_cast %294 : vector<1x1x64xf32> to vector<1x64xf32>
    %cst_133 = arith.constant dense<0.000000e+00> : vector<32xf32>
    %296 = vector.multi_reduction <add>, %291, %cst_133 [1] : vector<32x64xf32> to vector<32xf32>
    %297 = vector.shape_cast %296 : vector<32xf32> to vector<32x1xf32>
    %cst_134 = arith.constant 6.400000e+01 : f32
    %298 = vector.broadcast %cst_134 : f32 to vector<32x1xf32>
    %299 = arith.divf %297, %298 : vector<32x1xf32>
    %300 = vector.broadcast %299 : vector<32x1xf32> to vector<32x64xf32>
    %301 = arith.subf %291, %300 : vector<32x64xf32>
    %302 = arith.mulf %301, %301 : vector<32x64xf32>
    %cst_135 = arith.constant dense<0.000000e+00> : vector<32xf32>
    %303 = vector.multi_reduction <add>, %302, %cst_135 [1] : vector<32x64xf32> to vector<32xf32>
    %304 = vector.shape_cast %303 : vector<32xf32> to vector<32x1xf32>
    %cst_136 = arith.constant 6.400000e+01 : f32
    %305 = vector.broadcast %cst_136 : f32 to vector<32x1xf32>
    %306 = arith.divf %304, %305 : vector<32x1xf32>
    %307 = vector.broadcast %299 : vector<32x1xf32> to vector<32x64xf32>
    %308 = arith.subf %291, %307 : vector<32x64xf32>
    %cst_137 = arith.constant 9.99999974E-6 : f32
    %309 = vector.broadcast %cst_137 : f32 to vector<32x1xf32>
    %310 = arith.addf %306, %309 : vector<32x1xf32>
    %311 = math.rsqrt %310 : vector<32x1xf32>
    %312 = vector.broadcast %311 : vector<32x1xf32> to vector<32x64xf32>
    %313 = arith.mulf %308, %312 : vector<32x64xf32>
    %314 = vector.broadcast %293 : vector<1x64xf32> to vector<32x64xf32>
    %315 = arith.mulf %313, %314 : vector<32x64xf32>
    %316 = vector.broadcast %295 : vector<1x64xf32> to vector<32x64xf32>
    %317 = arith.addf %315, %316 : vector<32x64xf32>
    %c0_138 = arith.constant 0 : index
    %c0_139 = arith.constant 0 : index
    %318 = vector.load %arg20[%c0_138, %c0_139] : memref<32x64xf32, #tpu.memory_space<vmem>>, vector<32x64xf32>
    tpu.vector_store %arg20[%c0_138, %c0_139], %317 {strides = array<i32>} : memref<32x64xf32, #tpu.memory_space<vmem>>, vector<32x64xf32>,
    %319 = vector.extract_strided_slice %317 {offsets = [0, 0], sizes = [1, 64], strides = [1, 1]} : vector<32x64xf32> to vector<1x64xf32>
    %320 = vector.extract_strided_slice %317 {offsets = [8, 0], sizes = [1, 64], strides = [1, 1]} : vector<32x64xf32> to vector<1x64xf32>
    %321 = vector.extract_strided_slice %317 {offsets = [16, 0], sizes = [1, 64], strides = [1, 1]} : vector<32x64xf32> to vector<1x64xf32>
    %322 = vector.extract_strided_slice %317 {offsets = [24, 0], sizes = [1, 64], strides = [1, 1]} : vector<32x64xf32> to vector<1x64xf32>
    %323 = tpu.concatenate %319, %320, %321, %322 in 0 : vector<1x64xf32>, vector<1x64xf32>, vector<1x64xf32>, vector<1x64xf32> -> vector<4x64xf32>
    %324 = arith.truncf %323 : vector<4x64xf32> to vector<4x64xbf16>
    %c0_140 = arith.constant 0 : index
    %c0_141 = arith.constant 0 : index
    %325 = vector.load %arg16[%c0_140, %c0_141] : memref<64x64xbf16, #tpu.memory_space<vmem>>, vector<64x64xbf16>
    %cst_142 = arith.constant dense<0.000000e+00> : vector<4x64xf32>
    %326 = tpu.matmul %324, %325, %cst_142 {dimension_numbers = #tpu.dot_dimension_numbers<[1], [0], [0], [1], [0, 0, 1, 1], [], []>} : vector<4x64xbf16>, vector<64x64xbf16>, vector<4x64xf32> -> vector<4x64xf32>
    %c0_143 = arith.constant 0 : index
    %c0_144 = arith.constant 0 : index
    %327 = vector.load %arg17[%c0_143, %c0_144] : memref<1x64xf32, #tpu.memory_space<vmem>>, vector<1x64xf32>
    %328 = vector.broadcast %327 : vector<1x64xf32> to vector<4x64xf32>
    %329 = arith.addf %326, %328 : vector<4x64xf32>
    %330 = math.tanh %329 : vector<4x64xf32>
    %c0_145 = arith.constant 0 : index
    %c0_146 = arith.constant 0 : index
    %331 = vector.load %arg21[%c0_145, %c0_146] : memref<4x64xf32, #tpu.memory_space<vmem>>, vector<4x64xf32>
    tpu.vector_store %arg21[%c0_145, %c0_146], %330 {strides = array<i32>} : memref<4x64xf32, #tpu.memory_space<vmem>>, vector<4x64xf32>,
    %332 = vector.extract_strided_slice %330 {offsets = [0, 0], sizes = [2, 64], strides = [1, 1]} : vector<4x64xf32> to vector<2x64xf32>
    %333 = vector.extract_strided_slice %330 {offsets = [2, 0], sizes = [2, 64], strides = [1, 1]} : vector<4x64xf32> to vector<2x64xf32>
    %334 = tpu.concatenate %332, %333 in 1 : vector<2x64xf32>, vector<2x64xf32> -> vector<2x128xf32>
    %c0_147 = arith.constant 0 : index
    %c0_148 = arith.constant 0 : index
    %335 = vector.load %arg22[%c0_147, %c0_148] : memref<2x128xf32, #tpu.memory_space<vmem>>, vector<2x128xf32>
    tpu.vector_store %arg22[%c0_147, %c0_148], %334 {strides = array<i32>} : memref<2x128xf32, #tpu.memory_space<vmem>>, vector<2x128xf32>,
    %336 = arith.truncf %334 : vector<2x128xf32> to vector<2x128xbf16>
    %c0_149 = arith.constant 0 : index
    %c0_150 = arith.constant 0 : index
    %337 = vector.load %arg18[%c0_149, %c0_150] : memref<128x128xbf16, #tpu.memory_space<vmem>>, vector<128x128xbf16>
    %cst_151 = arith.constant dense<0.000000e+00> : vector<2x128xf32>
    %338 = tpu.matmul %336, %337, %cst_151 {dimension_numbers = #tpu.dot_dimension_numbers<[1], [0], [0], [1], [0, 0, 1, 1], [], []>} : vector<2x128xbf16>, vector<128x128xbf16>, vector<2x128xf32> -> vector<2x128xf32>
    %c0_152 = arith.constant 0 : index
    %c0_153 = arith.constant 0 : index
    %339 = vector.load %arg19[%c0_152, %c0_153] : memref<1x128xf32, #tpu.memory_space<vmem>>, vector<1x128xf32>
    %340 = vector.broadcast %339 : vector<1x128xf32> to vector<2x128xf32>
    %341 = arith.addf %338, %340 : vector<2x128xf32>
    %c0_154 = arith.constant 0 : index
    %c0_155 = arith.constant 0 : index
    %342 = vector.load %arg23[%c0_154, %c0_155] : memref<2x128xf32, #tpu.memory_space<vmem>>, vector<2x128xf32>
    tpu.vector_store %arg23[%c0_154, %c0_155], %341 {strides = array<i32>} : memref<2x128xf32, #tpu.memory_space<vmem>>, vector<2x128xf32>,
    return
  }
}

</mosaic_0001>

<bundles_post_ra>
// kernel: tpu_custom_call.1
= control target key start
LH: loop header
LB: loop body
LE: loop exit
PB: predicated region body
PF: predicated region fallthrough
CT: control target
= control target key end

     0   :  { %s4116_s0 = inlined_call_operand.hbm [shape: f32[32,64], index: 0, kind: input, shape index: {}]   ;;  %s4117_s1 = inlined_call_operand.hbm [shape: f32[32,32], index: 1, kind: input, shape index: {}]   ;;  %s4118_s2 = inlined_call_operand.hbm [shape: f32[1,64], index: 2, kind: input, shape index: {}]   ;;  %s4119_s3 = inlined_call_operand.hbm [shape: f32[1,64], index: 3, kind: input, shape index: {}]   ;;  %s4120_s4 = inlined_call_operand.vmem [shape: bf16[2,64,256], index: 4, kind: input, shape index: {}]   ;;  %s4121_s5 = inlined_call_operand.vmem [shape: f32[2,1,256], index: 5, kind: input, shape index: {}]   ;;  %s4122_s6 = inlined_call_operand.vmem [shape: bf16[2,64,64], index: 6, kind: input, shape index: {}]   ;;  %s4123_s7 = inlined_call_operand.vmem [shape: f32[2,1,64], index: 7, kind: input, shape index: {}]   ;;  %s4124_s8 = inlined_call_operand.vmem [shape: f32[2,1,64], index: 8, kind: input, shape index: {}]   ;;  %s4125_s9 = inlined_call_operand.vmem [shape: f32[2,1,64], index: 9, kind: input, shape index: {}]   ;;  %s4126_s10 = inlined_call_operand.hbm [shape: bf16[2,64,128], index: 10, kind: input, shape index: {}]   ;;  %s4127_s11 = inlined_call_operand.vmem [shape: f32[2,1,128], index: 11, kind: input, shape index: {}]   ;;  %s4128_s12 = inlined_call_operand.vmem [shape: bf16[2,128,64], index: 12, kind: input, shape index: {}]   ;;  %s4129_s13 = inlined_call_operand.vmem [shape: f32[2,1,64], index: 13, kind: input, shape index: {}]   ;;  %s4130_s14 = inlined_call_operand.vmem [shape: f32[2,1,64], index: 14, kind: input, shape index: {}]   ;;  %s4131_s15 = inlined_call_operand.vmem [shape: f32[2,1,64], index: 15, kind: input, shape index: {}]   ;;  %s4132_s16 = inlined_call_operand.hbm [shape: bf16[64,64], index: 16, kind: input, shape index: {}]   ;;  %s4133_s17 = inlined_call_operand.vmem [shape: f32[1,64], index: 17, kind: input, shape index: {}]   ;;  %s4134_s18 = inlined_call_operand.hbm [shape: bf16[128,128], index: 18, kind: input, shape index: {}]   ;;  %s4135_s19 = inlined_call_operand.vmem [shape: f32[1,128], index: 19, kind: input, shape index: {}]   ;;  %s4136_s20 = inlined_call_operand.hbm [shape: f32[32,64], index: 20, kind: output, shape index: {0}]   ;;  %s4137_s21 = inlined_call_operand.hbm [shape: f32[4,64], index: 21, kind: output, shape index: {1}]   ;;  %s4138_s22 = inlined_call_operand.hbm [shape: f32[2,128], index: 22, kind: output, shape index: {2}]   ;;  %s4139_s23 = inlined_call_operand.hbm [shape: f32[2,128], index: 23, kind: output, shape index: {3}]  }
   0x1   :  { %4144 = sst [smem:[#allocation27_spill]] %s4116_s0 }
   0x2   :  { %4145 = sst [smem:[#allocation28_spill]] %s4117_s1 }
   0x3   :  { %4146 = sst [smem:[#allocation29_spill]] %s4118_s2 }
   0x4   :  { %4147 = sst [smem:[#allocation30_spill]] %s4119_s3 }
   0x5   :  { %4148 = sst [smem:[#allocation31_spill]] %s4120_s4 }
   0x6   :  { %4149 = sst [smem:[#allocation32_spill]] %s4121_s5 }
   0x7   :  { %4150 = sst [smem:[#allocation33_spill]] %s4122_s6 }
   0x8   :  { %4151 = sst [smem:[#allocation34_spill]] %s4123_s7 }
   0x9   :  { %4152 = sst [smem:[#allocation35_spill]] %s4139_s23 }
   0xa   :  { %29 = vsyncpa [#allocation3], 0 }
   0xb   :  { %30 = vsyncpa [#allocation6], 0 }
   0xc   :  { %31 = vsyncpa [#allocation9], 0 }
   0xd   :  { %32 = vsyncpa [#allocation12], 0 }
   0xe   :  { %33 = vsyncpa [#allocation4], 0 }
   0xf   :  { %34 = vsyncpa [#allocation16], 0 }
  0x10   :  { %35 = vsyncpa [#allocation19], 0  ;;  %s3470_s4 = smov [#allocation5]   ;;  %s3471_s24 = smov [#allocation8]  }
  0x11   :  { %s53_s30 = sshll.u32 %s3470_s4, 4  ;;  %s76_s25 = sshll.u32 %s3471_s24, 4  ;;  %s54_s30 = int_to_ptr.vmem [resolvable:$true] %s53_s30  ;;  %s77_s25 = int_to_ptr.vmem [resolvable:$true] %s76_s25 }
  0x12   :  { %s3244_s5 = scalar_lea.vmem %s54_s30, 512  ;;  %p3249_p1 = scmp.lt.s32.totalorder %s54_s30, %s54_s30 }
  0x13   :  { %p3245_p0 = scmp.ne.s32.totalorder %s54_s30, %s3244_s5  ;;  %p3250_p2 = scmp.lt.s32.totalorder %s3244_s5, %s3244_s5 }
  0x15   :  { %p3251_p3 = por %p3250_p2, %p3249_p1 }
  0x17   :  { %p3252_p4 = pnand %p3251_p3, %p3245_p0 }
  0x19   :  { %3255 = shalt.err (!%p3252_p4)
}
  0x1a   :  { %s3472_s1 = smov 128   ;;  %s3473_s26 = smov 8  }
  0x1b   :  { %s4153_s27 = sld [smem:[#allocation28_spill]]  ;;  %s3264_s7 = scalar_lea.vmem %s77_s25, 16 }
  0x1c   :  { %p3265_p5 = scmp.ne.s32.totalorder %s77_s25, %s3264_s7  ;;  %s3268_s28 = scalar_lea.vmem %s77_s25, 32 }
  0x1d   :  { %p3269_p6 = scmp.lt.s32.totalorder %s77_s25, %s77_s25  ;;  %p3270_p7 = scmp.lt.s32.totalorder %s3268_s28, %s3264_s7 }
  0x1f   :  { %p3271_p8 = por %p3270_p7, %p3269_p6 }
  0x21   :  { %59 = dma.hbm_to_vmem [thread:$0]  %s4153_s27, 512, %s54_s30, [#allocation6], %s3472_s1, %s3472_s1, %s3473_s26  }
  0x22   :  { %p3272_p9 = pnand %p3271_p8, %p3265_p5 }
  0x24   :  { %3275 = shalt.err (!%p3272_p9)
}
  0x25   :  { %s4154_s0 = sld [smem:[#allocation30_spill]]  ;;  %s3474_s4 = smov [#allocation11]  }
  0x26   :  { %s119_s24 = sshll.u32 %s3474_s4, 4  ;;  %s3475_s5 = smov [#allocation2]   ;;  %s120_s24 = int_to_ptr.vmem [resolvable:$true] %s119_s24 }
  0x27   :  { %s41_s23 = sshll.u32 %s3475_s5, 4  ;;  %s3284_s2 = scalar_lea.vmem %s120_s24, 512  ;;  %s42_s23 = int_to_ptr.vmem [resolvable:$true] %s41_s23 }
  0x28   :  { %p3285_p10 = scmp.ne.s32.totalorder %s120_s24, %s3284_s2  ;;  %p3289_p11 = scmp.lt.s32.totalorder %s120_s24, %s120_s24 }
  0x29   :  { %p3290_p12 = scmp.lt.s32.totalorder %s3284_s2, %s3284_s2 }
  0x2b   :  { %79 = dma.hbm_to_vmem [thread:$0]  %s4154_s0, 16, %s77_s25, [#allocation9]  }
  0x2c   :  { %p3291_p13 = por %p3290_p12, %p3289_p11 }
  0x2e   :  { %p3292_p0 = pnand %p3291_p13, %p3285_p10 }
  0x30   :  { %3295 = shalt.err (!%p3292_p0)
}
  0x31   :  { %s3476_s30 = smov 64   ;;  %s3477_s6 = smov 4  }
  0x32   :  { %125 = dma.hbm_to_vmem [thread:$0]  %s4132_s16, 512, %s120_s24, [#allocation12], %s3476_s30, %s3476_s30, %s3477_s6  }
  0x33   :  { %s3304_s7 = scalar_lea.vmem %s42_s23, 512  ;;  %p3309_p2 = scmp.lt.s32.totalorder %s42_s23, %s42_s23 }
  0x34   :  { %p3305_p1 = scmp.ne.s32.totalorder %s42_s23, %s3304_s7  ;;  %p3310_p3 = scmp.lt.s32.totalorder %s3304_s7, %s3304_s7 }
  0x36   :  { %p3311_p4 = por %p3310_p3, %p3309_p2 }
  0x38   :  { %p3312_p5 = pnand %p3311_p4, %p3305_p1 }
  0x3a   :  { %3315 = shalt.err (!%p3312_p5)
}
  0x3b   :  { %s4155_s3 = sld [smem:[#allocation27_spill]]  ;;  %s3478_s0 = smov [#allocation7]  }
  0x3c   :  { %s66_s4 = sshll.u32 %s3478_s0, 4  ;;  %s3479_s5 = smov [#allocation10]   ;;  %s67_s4 = int_to_ptr.vmem [resolvable:$true] %s66_s4 }
  0x3d   :  { %s97_s2 = sshll.u32 %s3479_s5, 4  ;;  %s3324_s16 = scalar_lea.vmem %s67_s4, 16  ;;  %s98_s2 = int_to_ptr.vmem [resolvable:$true] %s97_s2 }
  0x3e   :  { %p3325_p6 = scmp.ne.s32.totalorder %s67_s4, %s3324_s16  ;;  %s3328_s24 = scalar_lea.vmem %s67_s4, 32 }
  0x3f   :  { %p3329_p7 = scmp.lt.s32.totalorder %s67_s4, %s67_s4  ;;  %p3330_p8 = scmp.lt.s32.totalorder %s3328_s24, %s3324_s16 }
  0x41   :  { %47 = dma.hbm_to_vmem [thread:$0]  %s4155_s3, 512, %s42_s23, [#allocation3], %s3472_s1, %s3472_s1, %s3473_s26  }
  0x42   :  { %p3331_p9 = por %p3330_p8, %p3329_p7 }
  0x44   :  { %p3332_p10 = pnand %p3331_p9, %p3325_p6 }
  0x46   :  { %3335 = shalt.err (!%p3332_p10)
}
  0x47   :  { %s4156_s7 = sld [smem:[#allocation29_spill]]  ;;  %s3344_s28 = scalar_lea.vmem %s98_s2, 1024 }
  0x48   :  { %p3345_p11 = scmp.ne.s32.totalorder %s98_s2, %s3344_s28  ;;  %p3349_p12 = scmp.lt.s32.totalorder %s98_s2, %s98_s2 }
  0x49   :  { %p3350_p13 = scmp.lt.s32.totalorder %s3344_s28, %s3344_s28 }
  0x4b   :  { %p3351_p0 = por %p3350_p13, %p3349_p12 }
  0x4d   :  { %69 = dma.hbm_to_vmem [thread:$0]  %s4156_s7, 16, %s67_s4, [#allocation6]  }
  0x4e   :  { %p3352_p1 = pnand %p3351_p0, %p3345_p11 }
  0x50   :  { %3355 = shalt.err (!%p3352_p1)
}
  0x51   :  { %103 = dma.hbm_to_vmem [thread:$0]  %s4126_s10, 1024, %s98_s2, [#allocation9], %s3476_s30, %s3476_s30, %s3477_s6  }
  0x52   :  { %s3480_s3 = smov [#allocation13]  }
  0x53   :  { %s133_s0 = sshll.u32 %s3480_s3, 4  ;;  %s134_s0 = int_to_ptr.vmem [resolvable:$true] %s133_s0 }
  0x54   :  { %s3364_s5 = scalar_lea.vmem %s134_s0, 1024  ;;  %p3369_p3 = scmp.lt.s32.totalorder %s134_s0, %s134_s0 }
  0x55   :  { %p3365_p2 = scmp.ne.s32.totalorder %s134_s0, %s3364_s5  ;;  %p3370_p4 = scmp.lt.s32.totalorder %s3364_s5, %s3364_s5 }
  0x57   :  { %p3371_p5 = por %p3370_p4, %p3369_p3 }
  0x59   :  { %p3372_p6 = pnand %p3371_p5, %p3365_p2 }
  0x5b   :  { %3375 = shalt.err (!%p3372_p6)
}
  0x5c   :  { %139 = dma.hbm_to_vmem [thread:$0]  %s4134_s18, 1024, %s134_s0, [#allocation12], %s3476_s30, %s3476_s30, %s3477_s6  }
  0x5d   :  { %3456 = dma.done.wait [#allocation3], 512  }
  0x5e   :  { %3457 = vsyncadd [#allocation3], 4294966784 }
  0x5f   :  { %3458 = dma.done.wait [#allocation6], 528  }
  0x60   :  { %3459 = vsyncadd [#allocation6], 4294966768 }
  0x61   :  { %3460 = dma.done.wait [#allocation9], 1040  }
  0x62   :  { %3461 = vsyncadd [#allocation9], 4294966256 }
  0x63   :  { %3462 = dma.done.wait [#allocation12], 1536  }
  0x64   :  { %3463 = vsyncadd [#allocation12], 4294965760  ;;  %vm170_vm0 = vcmask 523264   ;;  %v164_v0 = vld [vmem:[#allocation2] sm:$0xff]  ;;  %v166_v1 = vld [vmem:[#allocation2 + $0x10] sm:$0xff]  ;;  %s4157_s6 = sld [smem:[#allocation31_spill]] }
  0x65   :  { %v165_v2 = vld [vmem:[#allocation2 + $0x8] sm:$0xff]  ;;  %v171_v3 = vsel %vm170_vm0, %v164_v0, 0.0  ;;  %v177_v4 = vsel %vm170_vm0, %v166_v1, 0.0  ;;  %v167_v5 = vld [vmem:[#allocation2 + $0x18] sm:$0xff]  ;;  %v3481_v32 = vmov 0   ;;  %s4158_s24 = sld [smem:[#allocation32_spill]] }
  0x66   :  { %172 = vadd.xlane.f32.xlu0 %v171_v3  ;;  %178 = vadd.xlane.f32.xlu1 %v177_v4  ;;  %v174_v6 = vsel %vm170_vm0, %v165_v2, 0.0  ;;  %v180_v7 = vsel %vm170_vm0, %v167_v5, 0.0  ;;  %v2573_v51 = vld [vmem:[#allocation7] ss:$0 sm:$0xff]  ;;  %v2574_v56 = vld [vmem:[#allocation8] ss:$0 sm:$0xff] }
  0x67   :  { %348 = vmatprep.mubr.bf16.mxu0 %v3481_v32  ;;  %vm377_vm1 = vcmask 261120   ;;  %s3482_s27 = smov 32   ;;  %s3483_s25 = smov 96   ;;  %vm3485_vm2 = vmmov 0   ;;  %vm2300_vm3 = vcmask 1040384   ;;  %vm2302_vm4 = vcmask 1041408  }
  0x68   :  { %s4159_s23 = sld [smem:[#allocation33_spill]]  ;;  %vm2304_vm5 = vcmask 1042432   ;;  %vm2390_vm6 = vcmask 519168  }
  0x69   :  { %s4160_s2 = sld [smem:[#allocation34_spill]] }
  0x6a   :  { %175 = vadd.xlane.f32.xlu0 %v174_v6  ;;  %181 = vadd.xlane.f32.xlu1 %v180_v7  ;;  %v3042_v28 = vld [vmem:[%s4157_s6 + $0x34] ss:$8 sps:$4 sm:$0xff]   ;;  %v3044_v29 = vld [vmem:[%s4157_s6 + $0x30] ss:$8 sps:$4 sm:$0xff]   ;;  %v3045_v30 = vld [vmem:[%s4157_s6 + $0x24] ss:$8 sps:$4 sm:$0xff]  }
  0x6b   :  { %324 = vmatprep.subr.bf16.mxu0 %v3042_v28  ;;  %v3047_v31 = vld [vmem:[%s4157_s6 + $0x20] ss:$8 sps:$4 sm:$0xff]   ;;  %v3048_v33 = vld [vmem:[%s4157_s6 + $0x14] ss:$8 sps:$4 sm:$0xff]   ;;  %v3050_v34 = vld [vmem:[%s4157_s6 + $0x10] ss:$8 sps:$4 sm:$0xff]  }
  0x6c   :  { %325 = vmatpush1.bf16.msra.mxu0 %v3044_v29  ;;  %v3051_v35 = vld [vmem:[%s4157_s6 + $0x4] ss:$8 sps:$4 sm:$0xff]   ;;  %v3053_v36 = vld [vmem:[%s4157_s6] ss:$8 sps:$4 sm:$0xff]  }
  0x6d   :  { %326 = vmatprep.subr.bf16.mxu0 %v3045_v30 }
  0x70   :  { %327 = vmatpush1.bf16.msra.mxu0 %v3047_v31 }
  0x71   :  { %328 = vmatprep.subr.bf16.mxu0 %v3048_v33 }
  0x74   :  { %329 = vmatpush1.bf16.msra.mxu0 %v3050_v34 }
  0x75   :  { %330 = vmatprep.subr.bf16.mxu0 %v3051_v35 }
  0x78   :  { %331 = vmatpush1.bf16.msra.mxu0 %v3053_v36 }
  0xef   :  { %v173_v8 = vpop.xlane.xlu0 %172  ;;  %v179_v9 = vpop.xlane.xlu1 %178 }
  0xf0   :  { %v184_v10 = vmul.f32 0.015625, %v173_v8  ;;  %v186_v11 = vmul.f32 0.015625, %v179_v9  ;;  %v258_v8 = vld [vmem:[%s4158_s24] sm:$0x3] }
  0xf2   :  { %v188_v12 = vsub.f32 %v164_v0, %v184_v10  ;;  %v3650_v13 = vsub.f32 %v166_v1, %v186_v11 }
  0xf3   :  { %v176_v14 = vpop.xlane.xlu0 %175  ;;  %v182_v15 = vpop.xlane.xlu1 %181 }
  0xf4   :  { %v185_v16 = vmul.f32 0.015625, %v176_v14  ;;  %v187_v17 = vmul.f32 0.015625, %v182_v15  ;;  %v192_v18 = vmul.f32 %v188_v12, %v188_v12  ;;  %v194_v19 = vmul.f32 %v3650_v13, %v3650_v13 }
  0xf6   :  { %v189_v20 = vsub.f32 %v165_v2, %v185_v16  ;;  %v191_v21 = vsub.f32 %v167_v5, %v187_v17  ;;  %v196_v22 = vsel %vm170_vm0, %v192_v18, 0.0  ;;  %v202_v23 = vsel %vm170_vm0, %v194_v19, 0.0 }
  0xf7   :  { %197 = vadd.xlane.f32.xlu0 %v196_v22  ;;  %v260_v5 = vlaneseq }
  0xf8   :  { %v193_v24 = vmul.f32 %v189_v20, %v189_v20  ;;  %v195_v25 = vmul.f32 %v191_v21, %v191_v21 }
  0xf9   :  { %v3699_v6 = vshrl.u32 %v260_v5, 7 }
  0xfa   :  { %v199_v26 = vsel %vm170_vm0, %v193_v24, 0.0  ;;  %v205_v27 = vsel %vm170_vm0, %v195_v25, 0.0 }
  0xfb   :  { %203 = vadd.xlane.f32.xlu0 %v202_v23  ;;  %200 = vadd.xlane.f32.xlu1 %v199_v26  ;;  %v262_v7 = vsub.s32 0, %v3699_v6  ;;  %v266_v9 = vsub.s32 1, %v3699_v6 }
  0xfd   :  { %v263_v11 = vrot.slane %v258_v8, %v262_v7 }
  0xff   :  { %206 = vadd.xlane.f32.xlu1 %v205_v27 }
 0x180   :  { %v198_v37 = vpop.xlane.xlu0 %197 }
 0x181   :  { %v208_v38 = vmul.f32 0.015625, %v198_v37 }
 0x183   :  { %v212_v39 = vadd.f32 1e-05, %v208_v38 }
 0x184   :  { %v201_v40 = vpop.xlane.xlu1 %200  ;;  %v204_v41 = vpop.xlane.xlu0 %203 }
 0x185   :  { %3110 = vrsqrt.f32 %v212_v39  ;;  %v209_v42 = vmul.f32 0.015625, %v201_v40  ;;  %v210_v43 = vmul.f32 0.015625, %v204_v41 }
 0x187   :  { %v213_v44 = vadd.f32 1e-05, %v209_v42  ;;  %v214_v45 = vadd.f32 1e-05, %v210_v43 }
 0x188   :  { %v207_v46 = vpop.xlane.xlu1 %206 }
 0x189   :  { %3112 = vrsqrt.f32 %v213_v44  ;;  %v211_v47 = vmul.f32 0.015625, %v207_v46  ;;  %v244_v46 = vld [vmem:[#allocation5] sm:$0xff] }
 0x18a   :  { %3114 = vrsqrt.f32 %v214_v45 }
 0x18b   :  { %v215_v48 = vadd.f32 1e-05, %v211_v47 }
 0x18d   :  { %3116 = vrsqrt.f32 %v215_v48  ;;  %v246_v48 = vld [vmem:[#allocation5 + $0x10] sm:$0xff] }
 0x192   :  { %v3111_v49 = vpop.eup %3110 }
 0x193   :  { %v220_v50 = vmul.f32 %v3111_v49, %v188_v12 }
 0x195   :  { %v230_v54 = vmul.f32 %v2573_v51, %v220_v50 }
 0x196   :  { %v3113_v52 = vpop.eup %3112 }
 0x197   :  { %v221_v53 = vmul.f32 %v3113_v52, %v189_v20  ;;  %v3115_v55 = vpop.eup %3114  ;;  %v3683_v59 = vadd.f32 %v2574_v56, %v230_v54 }
 0x198   :  { %v222_v61 = vmul.f32 %v3115_v55, %v3650_v13  ;;  %v267_v13 = vrot.slane %v258_v8, %v266_v9  ;;  %v245_v55 = vld [vmem:[#allocation5 + $0x8] sm:$0xff] }
 0x199   :  { %v231_v57 = vmul.f32 %v2573_v51, %v221_v53 }
 0x19a   :  { %v3117_v58 = vpop.eup %3116  ;;  %v232_v1 = vmul.f32 %v2573_v51, %v222_v61 }
 0x19b   :  { %v3685_v60 = vadd.f32 %v2574_v56, %v231_v57  ;;  %v223_v62 = vmul.f32 %v3117_v58, %v191_v21 }
 0x19c   :  { %v3694_v3 = vadd.f32 %v2574_v56, %v232_v1 }
 0x19d   :  { %v248_v63 = vpack.c.bf16 %v3685_v60, %v3683_v59  ;;  %v233_v0 = vmul.f32 %v2573_v51, %v223_v62  ;;  %v3737_v62 = vld [vmem:[#allocation5 + $0x18] sm:$0xff] }
 0x19f   :  { %2583 = vmatmul.mubr.msk.bf16.vlgmr.msra.gmra.mxu0 %vm170_vm0, %v248_v63  ;;  %v3692_v2 = vadd.f32 %v2574_v56, %v233_v0 }
 0x1a0   :  { %358 = vmatprep.mubr.bf16.mxu0 %v3481_v32 }
 0x1a1   :  { %v249_v4 = vpack.c.bf16 %v3692_v2, %v3694_v3 }
 0x1a7   :  { %2584 = vmatmul.mubr.msk.bf16.gmra.mxu0 %vm170_vm0, %v249_v4 }
 0x25f   :  { %v350_v10 = vpop.f32.mrf.mxu0 }
 0x260   :  { %v351_v15 = vadd.f32 %v350_v10, %v263_v11 }
 0x261   :  { %v352_v12 = vpop.f32.mrf.mxu0 }
 0x262   :  { %v353_v18 = vadd.f32 %v352_v12, %v267_v13 }
 0x263   :  { %v354_v14 = vpop.f32.mrf.mxu0 }
 0x264   :  { %v355_v16 = vadd.f32 %v354_v14, %v263_v11 }
 0x265   :  { %v356_v17 = vpop.f32.mrf.mxu0 }
 0x266   :  { %v369_v19 = vpack.c.bf16 %v355_v16, %v351_v15  ;;  %v357_v20 = vadd.f32 %v356_v17, %v267_v13 }
 0x267   :  { %v360_v21 = vpop.f32.mrf.mxu0 }
 0x268   :  { %v3710_v22 = vpack.c.bf16 %v357_v20, %v353_v18  ;;  %554 = vrot.lane.b32.xlu1 %v369_v19, %s3482_s27  ;;  %2814 = vmatprep.mubr.msk.bf16.mxu1 %vm377_vm1, %v369_v19  ;;  %v361_v25 = vadd.f32 %v360_v21, %v263_v11 }
 0x269   :  { %v362_v23 = vpop.f32.mrf.mxu0 }
 0x26a   :  { %v363_v40 = vadd.f32 %v362_v23, %v267_v13 }
 0x26b   :  { %v364_v24 = vpop.f32.mrf.mxu0 }
 0x26c   :  { %v365_v26 = vadd.f32 %v364_v24, %v263_v11  ;;  %550 = vrot.lane.b32.xlu1 %v369_v19, %s3483_s25 }
 0x26d   :  { %v366_v36 = vpop.f32.mrf.mxu0 }
 0x26e   :  { %v370_v27 = vpack.c.bf16 %v365_v26, %v361_v25  ;;  %v367_v38 = vadd.f32 %v366_v36, %v267_v13 }
 0x270   :  { %552 = vrot.lane.b32.xlu1 %v370_v27, %s3483_s25  ;;  %556 = vrot.lane.b32.xlu0 %v370_v27, %s3482_s27  ;;  %v3727_v41 = vpack.c.bf16 %v367_v38, %v363_v40 }
 0x274   :  { %373 = vrot.lane.b32.xlu1 %v369_v19, %s3476_s30  ;;  %375 = vrot.lane.b32.xlu0 %v370_v27, %s3476_s30 }
 0x2da   :  { %v555_v28 = vpop.permute.xlu1 %554 }
 0x2db   :  { %v565_v39 = vsel %vm377_vm1, %v555_v28, 0 }
 0x2de   :  { %v551_v29 = vpop.permute.xlu1 %550 }
 0x2df   :  { %2830 = vmatprep.mubr.msk.bf16.mxu0 %vm377_vm1, %v551_v29 }
 0x2e2   :  { %v553_v30 = vpop.permute.xlu1 %552  ;;  %v557_v31 = vpop.permute.xlu0 %556 }
 0x2e3   :  { %v568_v33 = vsel %vm377_vm1, %v557_v31, 0  ;;  %2996 = vmatprep.subr.msk.bf16.mxu0 %vm377_vm1, %v557_v31 }
 0x2e4   :  { %2827 = vmatpush3.bf16.xpose.msra.mxu0 %v568_v33 }
 0x2e5   :  { %2997 = vmatprep.subr.msk.bf16.mxu0 %vm377_vm1, %v555_v28 }
 0x2e6   :  { %v376_v34 = vpop.permute.xlu0 %375  ;;  %v374_v37 = vpop.permute.xlu1 %373 }
 0x2e7   :  { %2994 = vmatprep.subr.msk.bf16.mxu1 %vm377_vm1, %v376_v34  ;;  %v388_v35 = vsel %vm377_vm1, %v376_v34, 0  ;;  %v385_v42 = vsel %vm377_vm1, %v374_v37, 0 }
 0x2e8   :  { %2811 = vmatpush3.bf16.xpose.msra.mxu1 %v388_v35 }
 0x2e9   :  { %2995 = vmatprep.subr.msk.bf16.mxu1 %vm377_vm1, %v374_v37 }
 0x2ec   :  { %2829 = vmatpush3.bf16.xpose.msra.mxu0 %v565_v39 }
 0x2f0   :  { %2813 = vmatpush3.bf16.xpose.msra.mxu1 %v385_v42 }
 0x2f1   :  { %2818 = vmatprep.subr.bf16.mxu1 %v3727_v41 }
 0x2f3   :  { %2831 = vmatmul.mubr.msk.bf16.vlgmr.msra.gmra.mxu0 %vm377_vm1, %v553_v30 }
 0x2f7   :  { %2815 = vmatmul.mubr.msk.bf16.vlgmr.msra.gmra.mxu1 %vm377_vm1, %v370_v27 }
 0x2f8   :  { %2819 = vmatpush3.bf16.msra.mxu1 %v3727_v41 }
 0x2f9   :  { %2820 = vmatprep.subr.bf16.mxu1 %v3710_v22 }
 0x2fc   :  { %2821 = vmatpush3.bf16.msra.mxu1 %v3710_v22 }
 0x3b3   :  { %v2832_v43 = vpop.f32.mrf.mxu0 }
 0x3b4   :  { %v621_v44 = vmul.f32 0.17677669, %v2832_v43 }
 0x3b5   :  { %v604_v45 = vpop.f32.mrf.mxu0 }
 0x3b6   :  { %v619_v47 = vmul.f32 0.17677669, %v604_v45  ;;  %v625_v54 = vadd.f32 %v621_v44, %v246_v48 }
 0x3b7   :  { %v2816_v49 = vpop.f32.mrf.mxu1  ;;  %v2833_v50 = vpop.f32.mrf.mxu0 }
 0x3b8   :  { %v623_v51 = vadd.f32 %v619_v47, %v244_v46  ;;  %v622_v56 = vmul.f32 0.17677669, %v2833_v50  ;;  %v633_v4 = vsel %vm377_vm1, %v625_v54, -inf  ;;  %v441_v13 = vmul.f32 0.17677669, %v2816_v49 }
 0x3b9   :  { %v424_v52 = vpop.f32.mrf.mxu1  ;;  %v607_v53 = vpop.f32.mrf.mxu0 }
 0x3ba   :  { %v620_v57 = vmul.f32 0.17677669, %v607_v53  ;;  %v627_v58 = vsel %vm377_vm1, %v623_v51, -inf  ;;  %v439_v0 = vmul.f32 0.17677669, %v424_v52  ;;  %v626_v11 = vadd.f32 %v622_v56, %v3737_v62 }
 0x3bb   :  { %628 = vmax.xlane.f32.xlu0 %v627_v58  ;;  %v2817_v61 = vpop.f32.mrf.mxu1  ;;  %v445_v20 = vadd.f32 %v441_v13, %v246_v48 }
 0x3bc   :  { %v624_v63 = vadd.f32 %v620_v57, %v245_v55  ;;  %v442_v5 = vmul.f32 0.17677669, %v2817_v61  ;;  %v636_v14 = vsel %vm377_vm1, %v626_v11, -inf  ;;  %v443_v16 = vadd.f32 %v439_v0, %v244_v46 }
 0x3bd   :  { %v427_v1 = vpop.f32.mrf.mxu1  ;;  %v453_v21 = vsel %vm377_vm1, %v445_v20, -inf }
 0x3be   :  { %v440_v8 = vmul.f32 0.17677669, %v427_v1  ;;  %v630_v10 = vsel %vm377_vm1, %v624_v63, -inf  ;;  %v446_v17 = vadd.f32 %v442_v5, %v3737_v62  ;;  %v447_v18 = vsel %vm377_vm1, %v443_v16, -inf }
 0x3bf   :  { %634 = vmax.xlane.f32.xlu0 %v633_v4  ;;  %631 = vmax.xlane.f32.xlu1 %v630_v10 }
 0x3c0   :  { %v444_v12 = vadd.f32 %v440_v8, %v245_v55  ;;  %v456_v19 = vsel %vm377_vm1, %v446_v17, -inf }
 0x3c2   :  { %v450_v15 = vsel %vm377_vm1, %v444_v12, -inf }
 0x3c3   :  { %637 = vmax.xlane.f32.xlu0 %v636_v14  ;;  %451 = vmax.xlane.f32.xlu1 %v450_v15 }
 0x3c7   :  { %448 = vmax.xlane.f32.xlu0 %v447_v18  ;;  %457 = vmax.xlane.f32.xlu1 %v456_v19 }
 0x3cb   :  { %454 = vmax.xlane.f32.xlu0 %v453_v21 }
 0x444   :  { %v629_v23 = vpop.xlane.xlu0 %628 }
 0x445   :  { %v639_v24 = vsub.f32 %v623_v51, %v629_v23 }
 0x447   :  { %v643_v29 = vmul.f32 1.442695, %v639_v24 }
 0x448   :  { %v635_v25 = vpop.xlane.xlu0 %634  ;;  %v632_v26 = vpop.xlane.xlu1 %631 }
 0x449   :  { %v641_v27 = vsub.f32 %v625_v54, %v635_v25  ;;  %v640_v30 = vsub.f32 %v624_v63, %v632_v26 }
 0x44b   :  { %v647_v28 = vmul.f32 1.442695, %v641_v27  ;;  %v645_v35 = vmul.f32 1.442695, %v640_v30 }
 0x44c   :  { %v638_v31 = vpop.xlane.xlu0 %637  ;;  %v452_v46 = vpop.xlane.xlu1 %451 }
 0x44d   :  { %v642_v33 = vsub.f32 %v626_v11, %v638_v31  ;;  %3118 = vpow2.f32 %v647_v28  ;;  %v460_v47 = vsub.f32 %v444_v12, %v452_v46 }
 0x44e   :  { %3120 = vpow2.f32 %v643_v29 }
 0x44f   :  { %v649_v34 = vmul.f32 1.442695, %v642_v33  ;;  %v465_v50 = vmul.f32 1.442695, %v460_v47 }
 0x450   :  { %v449_v45 = vpop.xlane.xlu0 %448  ;;  %v458_v52 = vpop.xlane.xlu1 %457 }
 0x451   :  { %3122 = vpow2.f32 %v649_v34  ;;  %v459_v49 = vsub.f32 %v443_v16, %v449_v45  ;;  %v462_v54 = vsub.f32 %v446_v17, %v458_v52 }
 0x452   :  { %3124 = vpow2.f32 %v645_v35 }
 0x453   :  { %v463_v53 = vmul.f32 1.442695, %v459_v49  ;;  %3126 = vpow2.f32 %v465_v50  ;;  %v469_v56 = vmul.f32 1.442695, %v462_v54 }
 0x454   :  { %v455_v48 = vpop.xlane.xlu0 %454 }
 0x455   :  { %v461_v51 = vsub.f32 %v445_v20, %v455_v48  ;;  %3128 = vpow2.f32 %v463_v53 }
 0x457   :  { %v467_v55 = vmul.f32 1.442695, %v461_v51 }
 0x459   :  { %3130 = vpow2.f32 %v467_v55 }
 0x45a   :  { %v3748_v36 = vpop.eup %3118  ;;  %3132 = vpow2.f32 %v469_v56 }
 0x45b   :  { %v657_v37 = vsel %vm377_vm1, %v3748_v36, 0.0  ;;  %v3121_v38 = vpop.eup %3120 }
 0x45c   :  { %658 = vadd.xlane.f32.xlu0 %v657_v37  ;;  %v651_v40 = vsel %vm377_vm1, %v3121_v38, 0.0 }
 0x45e   :  { %v3123_v39 = vpop.eup %3122 }
 0x45f   :  { %v660_v42 = vsel %vm377_vm1, %v3123_v39, 0.0  ;;  %v3125_v43 = vpop.eup %3124 }
 0x460   :  { %652 = vadd.xlane.f32.xlu0 %v651_v40  ;;  %661 = vadd.xlane.f32.xlu1 %v660_v42  ;;  %v654_v44 = vsel %vm377_vm1, %v3125_v43, 0.0  ;;  %v3055_v40 = vld [vmem:[%s4159_s23 + $0x10] sm:$0xff]   ;;  %v3056_v42 = vld [vmem:[%s4159_s23 + $0x8] sm:$0xff]  }
 0x464   :  { %655 = vadd.xlane.f32.xlu1 %v654_v44 }
 0x475   :  { %675 = vrot.lane.b32.xlu1 %v3710_v22, %s3483_s25  ;;  %v3127_v22 = vpop.eup %3126 }
 0x476   :  { %677 = vrot.lane.b32.xlu0 %v3727_v41, %s3483_s25  ;;  %v3129_v57 = vpop.eup %3128  ;;  %v474_v41 = vsel %vm377_vm1, %v3127_v22, 0.0 }
 0x477   :  { %v3131_v58 = vpop.eup %3130  ;;  %v471_v61 = vsel %vm377_vm1, %v3129_v57, 0.0 }
 0x478   :  { %v477_v63 = vsel %vm377_vm1, %v3131_v58, 0.0  ;;  %v3133_v0 = vpop.eup %3132 }
 0x479   :  { %v480_v1 = vsel %vm377_vm1, %v3133_v0, 0.0 }
 0x495   :  { %475 = vadd.xlane.f32.xlu0 %v474_v41 }
 0x499   :  { %472 = vadd.xlane.f32.xlu1 %v471_v61  ;;  %478 = vadd.xlane.f32.xlu0 %v477_v63 }
 0x49d   :  { %481 = vadd.xlane.f32.xlu1 %v480_v1 }
 0x4e5   :  { %v659_v4 = vpop.xlane.xlu0 %658 }
 0x4e9   :  { %v662_v5 = vpop.xlane.xlu1 %661  ;;  %v653_v8 = vpop.xlane.xlu0 %652 }
 0x4ea   :  { %3134 = vrcp.f32 %v662_v5 }
 0x4eb   :  { %3136 = vrcp.f32 %v653_v8  ;;  %v2593_v8 = vld [vmem:[%s4160_s2] ss:$0 sm:$0xff] }
 0x4ec   :  { %3138 = vrcp.f32 %v659_v4 }
 0x4ed   :  { %v656_v10 = vpop.xlane.xlu1 %655  ;;  %v678_v11 = vpop.permute.xlu0 %677 }
 0x4ee   :  { %3140 = vrcp.f32 %v656_v10  ;;  %2834 = vmatprep.subr.bf16.mxu0 %v678_v11 }
 0x4ef   :  { %2835 = vmatpush3.bf16.msra.mxu0 %v678_v11 }
 0x4f1   :  { %v676_v12 = vpop.permute.xlu1 %675 }
 0x4f2   :  { %2836 = vmatprep.subr.bf16.mxu0 %v676_v12 }
 0x4f3   :  { %2837 = vmatpush3.bf16.msra.mxu0 %v676_v12 }
 0x4f7   :  { %v3135_v13 = vpop.eup %3134 }
 0x4f8   :  { %v3137_v14 = vpop.eup %3136  ;;  %v670_v17 = vmul.f32 %v3135_v13, %v3123_v39  ;;  %v3054_v39 = vld [vmem:[%s4159_s23 + $0x18] sm:$0xff]  }
 0x4f9   :  { %v3139_v15 = vpop.eup %3138  ;;  %v667_v18 = vmul.f32 %v3137_v14, %v3121_v38  ;;  %2842 = vmatprep.subr.bf16.mxu0 %v3054_v39 }
 0x4fa   :  { %v669_v20 = vmul.f32 %v3139_v15, %v3748_v36 }
 0x4fb   :  { %v3141_v16 = vpop.eup %3140 }
 0x4fc   :  { %v668_v19 = vmul.f32 %v3141_v16, %v3125_v43  ;;  %v672_v23 = vpack.c.bf16 %v670_v17, %v669_v20  ;;  %v3057_v43 = vld [vmem:[%s4159_s23] sm:$0xff]  }
 0x4fe   :  { %v671_v21 = vpack.c.bf16 %v668_v19, %v667_v18 }
 0x500   :  { %2838 = vmatprep.mubr.msk.bf16.mxu0 %vm377_vm1, %v671_v21 }
 0x501   :  { %2839 = vmatmul.mubr.msk.bf16.vlgmr.msra.gmra.mxu0 %vm377_vm1, %v672_v23 }
 0x502   :  { %2843 = vmatpush3.bf16.msra.mxu0 %v3054_v39 }
 0x503   :  { %2844 = vmatprep.subr.bf16.mxu0 %v3055_v40 }
 0x506   :  { %2845 = vmatpush3.bf16.msra.mxu0 %v3055_v40 }
 0x507   :  { %2846 = vmatprep.subr.bf16.mxu0 %v3056_v42 }
 0x50a   :  { %2847 = vmatpush3.bf16.msra.mxu0 %v3056_v42 }
 0x50b   :  { %2848 = vmatprep.subr.bf16.mxu0 %v3057_v43 }
 0x50e   :  { %2849 = vmatpush3.bf16.msra.mxu0 %v3057_v43 }
 0x51e   :  { %v476_v24 = vpop.xlane.xlu0 %475 }
 0x51f   :  { %3142 = vrcp.f32 %v476_v24 }
 0x522   :  { %v473_v25 = vpop.xlane.xlu1 %472  ;;  %v479_v26 = vpop.xlane.xlu0 %478 }
 0x523   :  { %3144 = vrcp.f32 %v473_v25 }
 0x524   :  { %3146 = vrcp.f32 %v479_v26 }
 0x526   :  { %v482_v27 = vpop.xlane.xlu1 %481 }
 0x527   :  { %3148 = vrcp.f32 %v482_v27 }
 0x52c   :  { %v3143_v28 = vpop.eup %3142 }
 0x52d   :  { %v488_v31 = vmul.f32 %v3143_v28, %v3127_v22 }
 0x530   :  { %v3145_v29 = vpop.eup %3144 }
 0x531   :  { %v487_v30 = vmul.f32 %v3145_v29, %v3129_v57  ;;  %v3147_v33 = vpop.eup %3146 }
 0x532   :  { %v489_v36 = vmul.f32 %v3147_v33, %v3131_v58 }
 0x533   :  { %v491_v34 = vpack.c.bf16 %v488_v31, %v487_v30 }
 0x534   :  { %v3149_v35 = vpop.eup %3148 }
 0x535   :  { %2822 = vmatprep.mubr.msk.bf16.mxu1 %vm377_vm1, %v491_v34  ;;  %v490_v37 = vmul.f32 %v3149_v35, %v3133_v0 }
 0x537   :  { %v492_v38 = vpack.c.bf16 %v490_v37, %v489_v36 }
 0x539   :  { %2823 = vmatmul.mubr.msk.bf16.vlgmr.msra.gmra.mxu1 %vm377_vm1, %v492_v38 }
 0x5c1   :  { %v2840_v44 = vpop.f32.mrf.mxu0 }
 0x5c3   :  { %v721_v45 = vpop.f32.mrf.mxu0 }
 0x5c5   :  { %v2841_v46 = vpop.f32.mrf.mxu0 }
 0x5c6   :  { %v3027_v47 = vpack.i.bf16 %v2841_v46, %v2840_v44  ;;  %v3058_v44 = vld [vmem:[#allocation10 + $0x18] sm:$0xff]   ;;  %v3060_v46 = vld [vmem:[#allocation10 + $0x8] sm:$0xff]  }
 0x5c7   :  { %v724_v48 = vpop.f32.mrf.mxu0  ;;  %2854 = vmatprep.subr.bf16.mxu1 %v3058_v44 }
 0x5c8   :  { %v3022_v49 = vpack.i.bf16 %v724_v48, %v721_v45  ;;  %3028 = vrot.lane.b32.xlu1 %v3027_v47, %s3482_s27  ;;  %2855 = vmatpush3.bf16.msra.mxu1 %v3058_v44  ;;  %v3059_v45 = vld [vmem:[#allocation10 + $0x10] sm:$0xff]   ;;  %v3061_v47 = vld [vmem:[#allocation10] sm:$0xff]  }
 0x5c9   :  { %2856 = vmatprep.subr.bf16.mxu1 %v3059_v45 }
 0x5ca   :  { %3023 = vrot.lane.b32.xlu0 %v3022_v49, %s3482_s27 }
 0x5cc   :  { %2857 = vmatpush3.bf16.msra.mxu1 %v3059_v45 }
 0x5cd   :  { %2858 = vmatprep.subr.bf16.mxu1 %v3060_v46 }
 0x5d0   :  { %2859 = vmatpush3.bf16.msra.mxu1 %v3060_v46 }
 0x5d1   :  { %2860 = vmatprep.subr.bf16.mxu1 %v3061_v47 }
 0x5d4   :  { %2861 = vmatpush3.bf16.msra.mxu1 %v3061_v47 }
 0x5f9   :  { %v2824_v50 = vpop.f32.mrf.mxu1 }
 0x5fb   :  { %v535_v51 = vpop.f32.mrf.mxu1 }
 0x5fd   :  { %v2825_v52 = vpop.f32.mrf.mxu1 }
 0x5ff   :  { %v538_v41 = vpop.f32.mrf.mxu1 }
 0x63a   :  { %v3029_v53 = vpop.permute.xlu1 %3028 }
 0x63b   :  { %v3031_v54 = vunpack.i.h.bf16 %v3029_v53  ;;  %v3030_v55 = vunpack.i.l.bf16 %v3029_v53 }
 0x63c   :  { %v3024_v56 = vpop.permute.xlu0 %3023 }
 0x63d   :  { %v3026_v22 = vunpack.i.h.bf16 %v3024_v56  ;;  %v3025_v57 = vunpack.i.l.bf16 %v3024_v56  ;;  %v754_v58 = vsel %vm377_vm1, %v2824_v50, %v3030_v55  ;;  %v755_v61 = vsel %vm377_vm1, %v2825_v52, %v3031_v54 }
 0x63e   :  { %v757_v4 = vpack.c.bf16 %v755_v61, %v754_v58 }
 0x63f   :  { %v753_v63 = vsel %vm377_vm1, %v538_v41, %v3026_v22  ;;  %v752_v0 = vsel %vm377_vm1, %v535_v51, %v3025_v57 }
 0x640   :  { %v756_v1 = vpack.c.bf16 %v753_v63, %v752_v0  ;;  %v2600_v63 = vld [vmem:[%s4124_s8] ss:$0 sm:$0xff] }
 0x642   :  { %2850 = vmatprep.mubr.msk.bf16.mxu0 %vm170_vm0, %v756_v1 }
 0x643   :  { %2851 = vmatmul.mubr.msk.bf16.vlgmr.msra.gmra.mxu0 %vm170_vm0, %v757_v4 }
 0x703   :  { %v2852_v5 = vpop.f32.mrf.mxu0 }
 0x704   :  { %v846_v16 = vadd.f32 %v2852_v5, %v2593_v8  ;;  %v2601_v5 = vld [vmem:[%s4125_s9] ss:$0 sm:$0xff] }
 0x705   :  { %v837_v10 = vpop.f32.mrf.mxu0 }
 0x706   :  { %v838_v11 = vadd.f32 %v2593_v8, %v837_v10  ;;  %v854_v24 = vadd.f32 %v846_v16, %v3694_v3 }
 0x707   :  { %v2853_v12 = vpop.f32.mrf.mxu0 }
 0x708   :  { %v849_v13 = vadd.f32 %v2853_v12, %v2593_v8  ;;  %v852_v14 = vadd.f32 %v838_v11, %v3683_v59  ;;  %v864_v59 = vsel %vm170_vm0, %v854_v24, 0.0 }
 0x709   :  { %v840_v15 = vpop.f32.mrf.mxu0 }
 0x70a   :  { %v841_v17 = vadd.f32 %v2593_v8, %v840_v15  ;;  %v858_v18 = vsel %vm170_vm0, %v852_v14, 0.0  ;;  %v855_v19 = vadd.f32 %v849_v13, %v3692_v2 }
 0x70b   :  { %859 = vadd.xlane.f32.xlu1 %v858_v18 }
 0x70c   :  { %v853_v20 = vadd.f32 %v841_v17, %v3685_v60  ;;  %v867_v23 = vsel %vm170_vm0, %v855_v19, 0.0 }
 0x70e   :  { %v861_v21 = vsel %vm170_vm0, %v853_v20, 0.0 }
 0x70f   :  { %862 = vadd.xlane.f32.xlu0 %v861_v21  ;;  %868 = vadd.xlane.f32.xlu1 %v867_v23  ;;  %v3062_v23 = vld [vmem:[%s4128_s12 + $0x38] sm:$0xff]  }
 0x710   :  { %2866 = vmatprep.subr.bf16.mxu0 %v3062_v23 }
 0x711   :  { %2867 = vmatpush3.bf16.msra.mxu0 %v3062_v23 }
 0x713   :  { %865 = vadd.xlane.f32.xlu0 %v864_v59  ;;  %v3064_v59 = vld [vmem:[%s4128_s12 + $0x28] sm:$0xff]  }
 0x794   :  { %v860_v25 = vpop.xlane.xlu1 %859 }
 0x795   :  { %v870_v26 = vmul.f32 0.015625, %v860_v25  ;;  %v3065_v25 = vld [vmem:[%s4128_s12 + $0x20] sm:$0xff]  }
 0x797   :  { %v874_v27 = vsub.f32 %v852_v14, %v870_v26  ;;  %v3066_v26 = vld [vmem:[%s4128_s12 + $0x18] sm:$0xff]  }
 0x798   :  { %v863_v28 = vpop.xlane.xlu0 %862  ;;  %v869_v29 = vpop.xlane.xlu1 %868 }
 0x799   :  { %v871_v2 = vmul.f32 0.015625, %v863_v28  ;;  %v873_v30 = vmul.f32 0.015625, %v869_v29  ;;  %v878_v31 = vmul.f32 %v874_v27, %v874_v27  ;;  %v3068_v28 = vld [vmem:[%s4128_s12 + $0x8] sm:$0xff]   ;;  %v3069_v29 = vld [vmem:[%s4128_s12] sm:$0xff]  }
 0x79b   :  { %v875_v60 = vsub.f32 %v853_v20, %v871_v2  ;;  %v877_v33 = vsub.f32 %v855_v19, %v873_v30  ;;  %v882_v34 = vsel %vm170_vm0, %v878_v31, 0.0  ;;  %v2602_v2 = vld [vmem:[%s4127_s11] ss:$0 sm:$0xff] }
 0x79c   :  { %v866_v35 = vpop.xlane.xlu0 %865  ;;  %883 = vadd.xlane.f32.xlu0 %v882_v34 }
 0x79d   :  { %v872_v3 = vmul.f32 0.015625, %v866_v35  ;;  %v879_v36 = vmul.f32 %v875_v60, %v875_v60  ;;  %v881_v39 = vmul.f32 %v877_v33, %v877_v33 }
 0x79f   :  { %v876_v37 = vsub.f32 %v854_v24, %v872_v3  ;;  %v885_v38 = vsel %vm170_vm0, %v879_v36, 0.0  ;;  %v891_v43 = vsel %vm170_vm0, %v881_v39, 0.0  ;;  %v3063_v24 = vld [vmem:[%s4128_s12 + $0x30] sm:$0xff]  }
 0x7a0   :  { %886 = vadd.xlane.f32.xlu1 %v885_v38  ;;  %2868 = vmatprep.subr.bf16.mxu0 %v3063_v24 }
 0x7a1   :  { %v880_v40 = vmul.f32 %v876_v37, %v876_v37  ;;  %2869 = vmatpush3.bf16.msra.mxu0 %v3063_v24  ;;  %v2609_v24 = vld [vmem:[%s4129_s13] ss:$0 sm:$0xff] }
 0x7a2   :  { %2870 = vmatprep.subr.bf16.mxu0 %v3064_v59 }
 0x7a3   :  { %v888_v42 = vsel %vm170_vm0, %v880_v40, 0.0 }
 0x7a4   :  { %889 = vadd.xlane.f32.xlu0 %v888_v42  ;;  %892 = vadd.xlane.f32.xlu1 %v891_v43 }
 0x7a5   :  { %2871 = vmatpush3.bf16.msra.mxu0 %v3064_v59 }
 0x7a6   :  { %2872 = vmatprep.subr.bf16.mxu0 %v3065_v25 }
 0x7a9   :  { %2873 = vmatpush3.bf16.msra.mxu0 %v3065_v25 }
 0x7aa   :  { %2874 = vmatprep.subr.bf16.mxu0 %v3066_v26 }
 0x7ad   :  { %2875 = vmatpush3.bf16.msra.mxu0 %v3066_v26 }
 0x825   :  { %v884_v48 = vpop.xlane.xlu0 %883 }
 0x826   :  { %v894_v49 = vmul.f32 0.015625, %v884_v48 }
 0x828   :  { %v898_v50 = vadd.f32 1e-05, %v894_v49 }
 0x829   :  { %v887_v51 = vpop.xlane.xlu1 %886 }
 0x82a   :  { %3150 = vrsqrt.f32 %v898_v50  ;;  %v895_v52 = vmul.f32 0.015625, %v887_v51 }
 0x82c   :  { %v899_v53 = vadd.f32 1e-05, %v895_v52 }
 0x82d   :  { %v890_v54 = vpop.xlane.xlu0 %889  ;;  %v893_v55 = vpop.xlane.xlu1 %892 }
 0x82e   :  { %3152 = vrsqrt.f32 %v899_v53  ;;  %v896_v56 = vmul.f32 0.015625, %v890_v54  ;;  %v897_v22 = vmul.f32 0.015625, %v893_v55 }
 0x830   :  { %v900_v57 = vadd.f32 1e-05, %v896_v56  ;;  %v901_v41 = vadd.f32 1e-05, %v897_v22 }
 0x832   :  { %3154 = vrsqrt.f32 %v900_v57 }
 0x833   :  { %3156 = vrsqrt.f32 %v901_v41 }
 0x837   :  { %v3151_v58 = vpop.eup %3150 }
 0x838   :  { %v906_v61 = vmul.f32 %v3151_v58, %v874_v27  ;;  %v3067_v27 = vld [vmem:[%s4128_s12 + $0x10] sm:$0xff]  }
 0x839   :  { %2876 = vmatprep.subr.bf16.mxu0 %v3067_v27 }
 0x83a   :  { %v916_v4 = vmul.f32 %v2600_v63, %v906_v61  ;;  %2877 = vmatpush3.bf16.msra.mxu0 %v3067_v27 }
 0x83b   :  { %v3153_v0 = vpop.eup %3152  ;;  %2878 = vmatprep.subr.bf16.mxu0 %v3068_v28 }
 0x83c   :  { %v907_v1 = vmul.f32 %v3153_v0, %v875_v60  ;;  %v3809_v13 = vadd.f32 %v2601_v5, %v916_v4 }
 0x83e   :  { %v917_v8 = vmul.f32 %v2600_v63, %v907_v1  ;;  %2879 = vmatpush3.bf16.msra.mxu0 %v3068_v28 }
 0x83f   :  { %v3155_v10 = vpop.eup %3154  ;;  %2880 = vmatprep.subr.bf16.mxu0 %v3069_v29 }
 0x840   :  { %v3157_v11 = vpop.eup %3156  ;;  %v908_v12 = vmul.f32 %v3155_v10, %v876_v37  ;;  %v3811_v14 = vadd.f32 %v2601_v5, %v917_v8 }
 0x841   :  { %v909_v15 = vmul.f32 %v3157_v11, %v877_v33 }
 0x842   :  { %v930_v16 = vpack.c.bf16 %v3811_v14, %v3809_v13  ;;  %v918_v17 = vmul.f32 %v2600_v63, %v908_v12  ;;  %2881 = vmatpush3.bf16.msra.mxu0 %v3069_v29 }
 0x843   :  { %v919_v18 = vmul.f32 %v2600_v63, %v909_v15 }
 0x844   :  { %2862 = vmatprep.mubr.msk.bf16.mxu1 %vm170_vm0, %v930_v16  ;;  %v3816_v19 = vadd.f32 %v2601_v5, %v918_v17 }
 0x845   :  { %v3818_v20 = vadd.f32 %v2601_v5, %v919_v18 }
 0x847   :  { %v931_v21 = vpack.c.bf16 %v3818_v20, %v3816_v19 }
 0x849   :  { %2863 = vmatmul.mubr.msk.bf16.vlgmr.msra.gmra.mxu1 %vm170_vm0, %v931_v21 }
 0x84a   :  { %1364 = vmatprep.mubr.bf16.mxu1 %v3481_v32 }
 0x909   :  { %v2864_v30 = vpop.f32.mrf.mxu1 }
 0x90a   :  { %v1020_v31 = vadd.f32 %v2864_v30, %v2602_v2 }
 0x90b   :  { %v1011_v60 = vpop.f32.mrf.mxu1 }
 0x90c   :  { %v1028_v33 = vmul.f32 %v1020_v31, %v1020_v31  ;;  %v1012_v34 = vadd.f32 %v2602_v2, %v1011_v60 }
 0x90d   :  { %v2865_v35 = vpop.f32.mrf.mxu1 }
 0x90e   :  { %v1032_v3 = vmul.f32 %v1028_v33, %v1020_v31  ;;  %v1026_v36 = vmul.f32 %v1012_v34, %v1012_v34  ;;  %v1023_v37 = vadd.f32 %v2865_v35, %v2602_v2 }
 0x90f   :  { %v1014_v38 = vpop.f32.mrf.mxu1 }
 0x910   :  { %v1036_v39 = vmul.f32 0.044715, %v1032_v3  ;;  %v1030_v40 = vmul.f32 %v1026_v36, %v1012_v34  ;;  %v1029_v42 = vmul.f32 %v1023_v37, %v1023_v37  ;;  %v1015_v43 = vadd.f32 %v2602_v2, %v1014_v38 }
 0x912   :  { %v1040_v44 = vadd.f32 %v1036_v39, %v1020_v31  ;;  %v1034_v45 = vmul.f32 0.044715, %v1030_v40  ;;  %v1033_v46 = vmul.f32 %v1029_v42, %v1023_v37  ;;  %v1027_v47 = vmul.f32 %v1015_v43, %v1015_v43 }
 0x914   :  { %v1044_v48 = vmul.f32 0.7978846, %v1040_v44  ;;  %v1038_v49 = vadd.f32 %v1034_v45, %v1012_v34  ;;  %v1037_v50 = vmul.f32 0.044715, %v1033_v46  ;;  %v1031_v51 = vmul.f32 %v1027_v47, %v1015_v43 }
 0x916   :  { %v1042_v52 = vmul.f32 0.7978846, %v1038_v49  ;;  %v1041_v53 = vadd.f32 %v1037_v50, %v1023_v37  ;;  %v1035_v54 = vmul.f32 0.044715, %v1031_v51  ;;  %3158 = vtanh.f32 %v1044_v48 }
 0x918   :  { %3160 = vtanh.f32 %v1042_v52  ;;  %v1045_v55 = vmul.f32 0.7978846, %v1041_v53  ;;  %v1039_v56 = vadd.f32 %v1035_v54, %v1015_v43  ;;  %v3072_v54 = vld [vmem:[%s4157_s6 + $0x74] ss:$8 sps:$4 sm:$0xff]  }
 0x919   :  { %1340 = vmatprep.subr.bf16.mxu1 %v3072_v54 }
 0x91a   :  { %3162 = vtanh.f32 %v1045_v55  ;;  %v1043_v22 = vmul.f32 0.7978846, %v1039_v56  ;;  %v3070_v55 = vld [vmem:[%s4157_s6 + $0x70] ss:$8 sps:$4 sm:$0xff]   ;;  %v3075_v56 = vld [vmem:[%s4157_s6 + $0x64] ss:$8 sps:$4 sm:$0xff]  }
 0x91b   :  { %1341 = vmatpush1.bf16.msra.mxu1 %v3070_v55 }
 0x91c   :  { %3164 = vtanh.f32 %v1043_v22  ;;  %v3073_v22 = vld [vmem:[%s4157_s6 + $0x60] ss:$8 sps:$4 sm:$0xff]   ;;  %1342 = vmatprep.subr.bf16.mxu1 %v3075_v56 }
 0x91f   :  { %1343 = vmatpush1.bf16.msra.mxu1 %v3073_v22 }
 0x923   :  { %v3159_v57 = vpop.eup %3158 }
 0x924   :  { %v1052_v63 = vadd.f32 1.0, %v3159_v57  ;;  %v3078_v57 = vld [vmem:[%s4157_s6 + $0x54] ss:$8 sps:$4 sm:$0xff]  }
 0x925   :  { %v3161_v41 = vpop.eup %3160  ;;  %1344 = vmatprep.subr.bf16.mxu1 %v3078_v57 }
 0x926   :  { %v1050_v58 = vadd.f32 1.0, %v3161_v41  ;;  %v1056_v10 = vmul.f32 0.5, %v1052_v63  ;;  %v3076_v41 = vld [vmem:[%s4157_s6 + $0x50] ss:$8 sps:$4 sm:$0xff]  }
 0x927   :  { %v3163_v61 = vpop.eup %3162  ;;  %1345 = vmatpush1.bf16.msra.mxu1 %v3076_v41 }
 0x928   :  { %v1053_v0 = vadd.f32 1.0, %v3163_v61  ;;  %v1054_v8 = vmul.f32 0.5, %v1050_v58  ;;  %v1060_v17 = vmul.f32 %v1056_v10, %v1020_v31  ;;  %v3081_v58 = vld [vmem:[%s4157_s6 + $0x44] ss:$8 sps:$4 sm:$0xff]   ;;  %v3079_v61 = vld [vmem:[%s4157_s6 + $0x40] ss:$8 sps:$4 sm:$0xff]  }
 0x929   :  { %v3165_v1 = vpop.eup %3164  ;;  %1346 = vmatprep.subr.bf16.mxu1 %v3081_v58 }
 0x92a   :  { %v1057_v4 = vmul.f32 0.5, %v1053_v0  ;;  %v1051_v5 = vadd.f32 1.0, %v3165_v1  ;;  %v1058_v15 = vmul.f32 %v1054_v8, %v1012_v34 }
 0x92b   :  { %1347 = vmatpush1.bf16.msra.mxu1 %v3079_v61 }
 0x92c   :  { %v1055_v11 = vmul.f32 0.5, %v1051_v5  ;;  %v1061_v12 = vmul.f32 %v1057_v4, %v1023_v37 }
 0x92e   :  { %v1059_v16 = vmul.f32 %v1055_v11, %v1015_v43  ;;  %v1063_v21 = vpack.c.bf16 %v1061_v12, %v1060_v17 }
 0x930   :  { %v1062_v18 = vpack.c.bf16 %v1059_v16, %v1058_v15 }
 0x932   :  { %2882 = vmatprep.mubr.bf16.mxu0 %v1062_v18 }
 0x933   :  { %2883 = vmatmul.mubr.bf16.vlgmr.msra.gmra.mxu0 %v1063_v21 }
 0x9f3   :  { %v2884_v23 = vpop.f32.mrf.mxu0 }
 0x9f4   :  { %v1178_v25 = vadd.f32 %v2884_v23, %v2609_v24  ;;  %v2618_v23 = vld [vmem:[%s4130_s14] ss:$0 sm:$0xff] }
 0x9f5   :  { %v1169_v59 = vpop.f32.mrf.mxu0 }
 0x9f6   :  { %v1170_v26 = vadd.f32 %v2609_v24, %v1169_v59  ;;  %v1186_v60 = vadd.f32 %v1178_v25, %v3816_v19 }
 0x9f7   :  { %v2885_v27 = vpop.f32.mrf.mxu0 }
 0x9f8   :  { %v1184_v28 = vadd.f32 %v1170_v26, %v3809_v13  ;;  %v1181_v2 = vadd.f32 %v2885_v27, %v2609_v24  ;;  %v1196_v35 = vsel %vm170_vm0, %v1186_v60, 0.0  ;;  %v2619_v27 = vld [vmem:[%s4131_s15] ss:$0 sm:$0xff] }
 0x9f9   :  { %v1172_v29 = vpop.f32.mrf.mxu0 }
 0x9fa   :  { %v1173_v30 = vadd.f32 %v2609_v24, %v1172_v29  ;;  %v1190_v31 = vsel %vm170_vm0, %v1184_v28, 0.0  ;;  %v1187_v3 = vadd.f32 %v1181_v2, %v3818_v20 }
 0x9fb   :  { %1191 = vadd.xlane.f32.xlu0 %v1190_v31 }
 0x9fc   :  { %v1185_v33 = vadd.f32 %v1173_v30, %v3811_v14  ;;  %v1199_v13 = vsel %vm170_vm0, %v1187_v3, 0.0 }
 0x9fe   :  { %v1193_v34 = vsel %vm170_vm0, %v1185_v33, 0.0 }
 0x9ff   :  { %1194 = vadd.xlane.f32.xlu1 %v1193_v34  ;;  %1197 = vadd.xlane.f32.xlu0 %v1196_v35 }
 0xa03   :  { %1200 = vadd.xlane.f32.xlu1 %v1199_v13 }
 0xa84   :  { %v1192_v36 = vpop.xlane.xlu0 %1191 }
 0xa85   :  { %v1202_v37 = vmul.f32 0.015625, %v1192_v36 }
 0xa87   :  { %v1206_v38 = vsub.f32 %v1184_v28, %v1202_v37  ;;  %v2628_v37 = vld [vmem:[%s4158_s24 + $0x2] sm:$0x3]  ;;  %s3487_s24 = smov [#allocation14]  }
 0xa88   :  { %v1195_v39 = vpop.xlane.xlu1 %1194  ;;  %v1198_v40 = vpop.xlane.xlu0 %1197 }
 0xa89   :  { %v1203_v19 = vmul.f32 0.015625, %v1195_v39  ;;  %v1204_v42 = vmul.f32 0.015625, %v1198_v40  ;;  %v1210_v43 = vmul.f32 %v1206_v38, %v1206_v38  ;;  %v1279_v39 = vrot.slane %v2628_v37, %v262_v7 }
 0xa8b   :  { %v1207_v14 = vsub.f32 %v1185_v33, %v1203_v19  ;;  %v1208_v44 = vsub.f32 %v1186_v60, %v1204_v42  ;;  %v1214_v45 = vsel %vm170_vm0, %v1210_v43, 0.0 }
 0xa8c   :  { %v1201_v46 = vpop.xlane.xlu1 %1200  ;;  %1215 = vadd.xlane.f32.xlu0 %v1214_v45 }
 0xa8d   :  { %v1205_v20 = vmul.f32 0.015625, %v1201_v46  ;;  %v1211_v47 = vmul.f32 %v1207_v14, %v1207_v14  ;;  %v1212_v48 = vmul.f32 %v1208_v44, %v1208_v44 }
 0xa8f   :  { %v1209_v49 = vsub.f32 %v1187_v3, %v1205_v20  ;;  %v1217_v50 = vsel %vm170_vm0, %v1211_v47, 0.0  ;;  %v1220_v51 = vsel %vm170_vm0, %v1212_v48, 0.0  ;;  %v1283_v20 = vrot.slane %v2628_v37, %v266_v9 }
 0xa90   :  { %1218 = vadd.xlane.f32.xlu1 %v1217_v50  ;;  %1221 = vadd.xlane.f32.xlu0 %v1220_v51 }
 0xa91   :  { %v1213_v52 = vmul.f32 %v1209_v49, %v1209_v49 }
 0xa93   :  { %v1223_v53 = vsel %vm170_vm0, %v1213_v52, 0.0 }
 0xa94   :  { %1224 = vadd.xlane.f32.xlu1 %v1223_v53 }
 0xb15   :  { %v1216_v63 = vpop.xlane.xlu0 %1215 }
 0xb16   :  { %v1226_v0 = vmul.f32 0.015625, %v1216_v63 }
 0xb18   :  { %v1230_v1 = vadd.f32 1e-05, %v1226_v0 }
 0xb19   :  { %v1219_v4 = vpop.xlane.xlu1 %1218  ;;  %v1222_v5 = vpop.xlane.xlu0 %1221 }
 0xb1a   :  { %3166 = vrsqrt.f32 %v1230_v1  ;;  %v1227_v8 = vmul.f32 0.015625, %v1219_v4  ;;  %v1228_v10 = vmul.f32 0.015625, %v1222_v5 }
 0xb1c   :  { %v1231_v11 = vadd.f32 1e-05, %v1227_v8  ;;  %v1232_v12 = vadd.f32 1e-05, %v1228_v10 }
 0xb1d   :  { %v1225_v15 = vpop.xlane.xlu1 %1224 }
 0xb1e   :  { %3168 = vrsqrt.f32 %v1231_v11  ;;  %v1229_v16 = vmul.f32 0.015625, %v1225_v15  ;;  %v3232_v11 = vld [vmem:[#allocation5] sm:$0xff] }
 0xb1f   :  { %3170 = vrsqrt.f32 %v1232_v12 }
 0xb20   :  { %v1233_v17 = vadd.f32 1e-05, %v1229_v16 }
 0xb22   :  { %3172 = vrsqrt.f32 %v1233_v17 }
 0xb27   :  { %v3167_v18 = vpop.eup %3166 }
 0xb28   :  { %v1238_v21 = vmul.f32 %v3167_v18, %v1206_v38 }
 0xb2a   :  { %v1248_v25 = vmul.f32 %v2618_v23, %v1238_v21  ;;  %v3233_v21 = vld [vmem:[#allocation5 + $0x10] sm:$0xff] }
 0xb2b   :  { %v3169_v24 = vpop.eup %3168 }
 0xb2c   :  { %v1239_v59 = vmul.f32 %v3169_v24, %v1207_v14  ;;  %v3171_v26 = vpop.eup %3170  ;;  %v3896_v2 = vadd.f32 %v2619_v27, %v1248_v25  ;;  %v3234_v24 = vld [vmem:[#allocation5 + $0x8] sm:$0xff] }
 0xb2d   :  { %v1240_v31 = vmul.f32 %v3171_v26, %v1208_v44 }
 0xb2e   :  { %v1249_v28 = vmul.f32 %v2618_v23, %v1239_v59 }
 0xb2f   :  { %v3173_v29 = vpop.eup %3172  ;;  %v1250_v35 = vmul.f32 %v2618_v23, %v1240_v31 }
 0xb30   :  { %v3898_v30 = vadd.f32 %v2619_v27, %v1249_v28  ;;  %v1241_v60 = vmul.f32 %v3173_v29, %v1209_v49 }
 0xb31   :  { %v3906_v13 = vadd.f32 %v2619_v27, %v1250_v35 }
 0xb32   :  { %v1262_v33 = vpack.c.bf16 %v3898_v30, %v3896_v2  ;;  %v1251_v34 = vmul.f32 %v2618_v23, %v1241_v60 }
 0xb34   :  { %2637 = vmatmul.mubr.msk.bf16.vlgmr.msra.gmra.mxu1 %vm170_vm0, %v1262_v33  ;;  %v3904_v3 = vadd.f32 %v2619_v27, %v1251_v34 }
 0xb35   :  { %1374 = vmatprep.mubr.bf16.mxu1 %v3481_v32 }
 0xb36   :  { %v1263_v36 = vpack.c.bf16 %v3904_v3, %v3906_v13 }
 0xb3c   :  { %2638 = vmatmul.mubr.msk.bf16.gmra.mxu1 %vm170_vm0, %v1263_v36 }
 0xbf4   :  { %v1366_v38 = vpop.f32.mrf.mxu1 }
 0xbf5   :  { %v1367_v32 = vadd.f32 %v1366_v38, %v1279_v39 }
 0xbf6   :  { %v1368_v40 = vpop.f32.mrf.mxu1 }
 0xbf7   :  { %v1369_v53 = vadd.f32 %v1368_v40, %v1283_v20 }
 0xbf8   :  { %v1370_v19 = vpop.f32.mrf.mxu1 }
 0xbf9   :  { %v1371_v42 = vadd.f32 %v1370_v19, %v1279_v39 }
 0xbfa   :  { %v1372_v43 = vpop.f32.mrf.mxu1 }
 0xbfb   :  { %v1385_v14 = vpack.c.bf16 %v1371_v42, %v1367_v32  ;;  %v1373_v7 = vadd.f32 %v1372_v43, %v1283_v20  ;;  %v3235_v42 = vld [vmem:[#allocation5 + $0x18] sm:$0xff] }
 0xbfc   :  { %v1376_v44 = vpop.f32.mrf.mxu1 }
 0xbfd   :  { %1389 = vrot.lane.b32.xlu1 %v1385_v14, %s3476_s30  ;;  %2890 = vmatprep.mubr.msk.bf16.mxu1 %vm377_vm1, %v1385_v14  ;;  %v1377_v47 = vadd.f32 %v1376_v44, %v1279_v39  ;;  %v3924_v55 = vpack.c.bf16 %v1373_v7, %v1369_v53 }
 0xbfe   :  { %v1378_v45 = vpop.f32.mrf.mxu1 }
 0xbff   :  { %v1379_v50 = vadd.f32 %v1378_v45, %v1283_v20 }
 0xc00   :  { %v1380_v46 = vpop.f32.mrf.mxu1 }
 0xc01   :  { %v1381_v48 = vadd.f32 %v1380_v46, %v1279_v39 }
 0xc02   :  { %v1382_v49 = vpop.f32.mrf.mxu1 }
 0xc03   :  { %v1386_v51 = vpack.c.bf16 %v1381_v48, %v1377_v47  ;;  %v1383_v52 = vadd.f32 %v1382_v49, %v1283_v20 }
 0xc05   :  { %v3920_v54 = vpack.c.bf16 %v1383_v52, %v1379_v50  ;;  %1571 = vrot.lane.b32.xlu1 %v1386_v51, %s3482_s27  ;;  %1391 = vrot.lane.b32.xlu0 %v1386_v51, %s3476_s30 }
 0xc07   :  { %2894 = vmatprep.subr.bf16.mxu0 %v3920_v54 }
 0xc08   :  { %2895 = vmatpush3.bf16.msra.mxu0 %v3920_v54 }
 0xc09   :  { %2896 = vmatprep.subr.bf16.mxu0 %v3924_v55  ;;  %1569 = vrot.lane.b32.xlu1 %v1385_v14, %s3482_s27 }
 0xc0a   :  { %1565 = vrot.lane.b32.xlu0 %v1385_v14, %s3483_s25 }
 0xc0c   :  { %2897 = vmatpush3.bf16.msra.mxu0 %v3924_v55 }
 0xc0d   :  { %1567 = vrot.lane.b32.xlu1 %v1386_v51, %s3483_s25 }
 0xc6f   :  { %v1390_v56 = vpop.permute.xlu1 %1389 }
 0xc70   :  { %v1400_v22 = vsel %vm377_vm1, %v1390_v56, 0 }
 0xc77   :  { %v1392_v6 = vpop.permute.xlu0 %1391  ;;  %v1572_v57 = vpop.permute.xlu1 %1571 }
 0xc78   :  { %v1403_v9 = vsel %vm377_vm1, %v1392_v6, 0  ;;  %2998 = vmatprep.subr.msk.bf16.mxu1 %vm377_vm1, %v1392_v6  ;;  %v1583_v41 = vsel %vm377_vm1, %v1572_v57, 0 }
 0xc79   :  { %2887 = vmatpush3.bf16.xpose.msra.mxu1 %v1403_v9 }
 0xc7a   :  { %2999 = vmatprep.subr.msk.bf16.mxu1 %vm377_vm1, %v1390_v56 }
 0xc7b   :  { %v1570_v61 = vpop.permute.xlu1 %1569 }
 0xc7c   :  { %v1566_v58 = vpop.permute.xlu0 %1565  ;;  %v1580_v63 = vsel %vm377_vm1, %v1570_v61, 0 }
 0xc7f   :  { %v1568_v0 = vpop.permute.xlu1 %1567 }
 0xc81   :  { %2889 = vmatpush3.bf16.xpose.msra.mxu1 %v1400_v22 }
 0xc82   :  { %3000 = vmatprep.subr.msk.bf16.mxu1 %vm377_vm1, %v1572_v57 }
 0xc88   :  { %2891 = vmatmul.mubr.msk.bf16.vlgmr.msra.gmra.mxu1 %vm377_vm1, %v1386_v51 }
 0xc89   :  { %2903 = vmatpush3.bf16.xpose.msra.mxu1 %v1583_v41  ;;  %2906 = vmatprep.mubr.msk.bf16.mxu1 %vm377_vm1, %v1566_v58 }
 0xc8a   :  { %3001 = vmatprep.subr.msk.bf16.mxu1 %vm377_vm1, %v1570_v61 }
 0xc91   :  { %2905 = vmatpush3.bf16.xpose.msra.mxu1 %v1580_v63 }
 0xc98   :  { %2907 = vmatmul.mubr.msk.bf16.vlgmr.msra.gmra.mxu1 %vm377_vm1, %v1568_v0 }
 0xd48   :  { %v2892_v1 = vpop.f32.mrf.mxu1 }
 0xd49   :  { %v1456_v5 = vmul.f32 0.17677669, %v2892_v1 }
 0xd4a   :  { %v1439_v4 = vpop.f32.mrf.mxu1 }
 0xd4b   :  { %v1454_v8 = vmul.f32 0.17677669, %v1439_v4  ;;  %v1460_v23 = vadd.f32 %v3233_v21, %v1456_v5 }
 0xd4c   :  { %v2893_v10 = vpop.f32.mrf.mxu1 }
 0xd4d   :  { %v1458_v12 = vadd.f32 %v3232_v11, %v1454_v8  ;;  %v1457_v16 = vmul.f32 0.17677669, %v2893_v10  ;;  %v1468_v25 = vsel %vm377_vm1, %v1460_v23, -inf }
 0xd4e   :  { %v1442_v15 = vpop.f32.mrf.mxu1 }
 0xd4f   :  { %v1455_v17 = vmul.f32 0.17677669, %v1442_v15  ;;  %v1462_v18 = vsel %vm377_vm1, %v1458_v12, -inf  ;;  %v1461_v27 = vadd.f32 %v1457_v16, %v3737_v62 }
 0xd50   :  { %1463 = vmax.xlane.f32.xlu0 %v1462_v18 }
 0xd51   :  { %v1459_v59 = vadd.f32 %v3234_v24, %v1455_v17  ;;  %v1471_v28 = vsel %vm377_vm1, %v1461_v27, -inf }
 0xd53   :  { %v1465_v26 = vsel %vm377_vm1, %v1459_v59, -inf }
 0xd54   :  { %1469 = vmax.xlane.f32.xlu0 %v1468_v25  ;;  %1466 = vmax.xlane.f32.xlu1 %v1465_v26 }
 0xd58   :  { %1472 = vmax.xlane.f32.xlu0 %v1471_v28  ;;  %v2908_v29 = vpop.f32.mrf.mxu1 }
 0xd59   :  { %v1636_v60 = vmul.f32 0.17677669, %v2908_v29 }
 0xd5a   :  { %v1619_v31 = vpop.f32.mrf.mxu1 }
 0xd5b   :  { %v1634_v33 = vmul.f32 0.17677669, %v1619_v31  ;;  %v1640_v40 = vadd.f32 %v3233_v21, %v1636_v60 }
 0xd5c   :  { %v2909_v34 = vpop.f32.mrf.mxu1 }
 0xd5d   :  { %v1638_v35 = vadd.f32 %v3232_v11, %v1634_v33  ;;  %v1637_v37 = vmul.f32 0.17677669, %v2909_v34  ;;  %v1648_v62 = vsel %vm377_vm1, %v1640_v40, -inf }
 0xd5e   :  { %v1622_v36 = vpop.f32.mrf.mxu1 }
 0xd5f   :  { %v1635_v38 = vmul.f32 0.17677669, %v1622_v36  ;;  %v1642_v39 = vsel %vm377_vm1, %v1638_v35, -inf  ;;  %v1641_v43 = vadd.f32 %v3235_v42, %v1637_v37 }
 0xd60   :  { %1643 = vmax.xlane.f32.xlu0 %v1642_v39 }
 0xd61   :  { %v1639_v19 = vadd.f32 %v3234_v24, %v1635_v38  ;;  %v1651_v14 = vsel %vm377_vm1, %v1641_v43, -inf }
 0xd63   :  { %v1645_v32 = vsel %vm377_vm1, %v1639_v19, -inf }
 0xd64   :  { %1649 = vmax.xlane.f32.xlu0 %v1648_v62  ;;  %1646 = vmax.xlane.f32.xlu1 %v1645_v32 }
 0xd68   :  { %1652 = vmax.xlane.f32.xlu1 %v1651_v14 }
 0xdd9   :  { %v1464_v44 = vpop.xlane.xlu0 %1463 }
 0xdda   :  { %v1474_v45 = vsub.f32 %v1458_v12, %v1464_v44 }
 0xddc   :  { %v1478_v7 = vmul.f32 1.442695, %v1474_v45 }
 0xddd   :  { %v1467_v46 = vpop.xlane.xlu1 %1466  ;;  %v1470_v20 = vpop.xlane.xlu0 %1469 }
 0xdde   :  { %v1476_v47 = vsub.f32 %v1460_v23, %v1470_v20  ;;  %v1475_v48 = vsub.f32 %v1459_v59, %v1467_v46 }
 0xde0   :  { %v1482_v49 = vmul.f32 1.442695, %v1476_v47  ;;  %v1480_v52 = vmul.f32 1.442695, %v1475_v48 }
 0xde1   :  { %v1473_v50 = vpop.xlane.xlu0 %1472 }
 0xde2   :  { %v1477_v51 = vsub.f32 %v1461_v27, %v1473_v50  ;;  %3174 = vpow2.f32 %v1482_v49 }
 0xde3   :  { %3176 = vpow2.f32 %v1478_v7 }
 0xde4   :  { %v1484_v53 = vmul.f32 1.442695, %v1477_v51 }
 0xde6   :  { %3178 = vpow2.f32 %v1484_v53  ;;  %v3083_v53 = vld [vmem:[%s4159_s23 + $0x30] sm:$0xff]  }
 0xde7   :  { %3180 = vpow2.f32 %v1480_v52  ;;  %v3082_v52 = vld [vmem:[%s4159_s23 + $0x38] sm:$0xff]  }
 0xde9   :  { %v1644_v6 = vpop.xlane.xlu0 %1643 }
 0xdea   :  { %v1654_v9 = vsub.f32 %v1638_v35, %v1644_v6 }
 0xdec   :  { %v1658_v63 = vmul.f32 1.442695, %v1654_v9 }
 0xded   :  { %v1647_v56 = vpop.xlane.xlu1 %1646  ;;  %v1650_v22 = vpop.xlane.xlu0 %1649 }
 0xdee   :  { %v1656_v57 = vsub.f32 %v1640_v40, %v1650_v22  ;;  %v1655_v58 = vsub.f32 %v1639_v19, %v1647_v56  ;;  %v3084_v22 = vld [vmem:[%s4159_s23 + $0x28] sm:$0xff]  }
 0xdef   :  { %v3175_v41 = vpop.eup %3174 }
 0xdf0   :  { %v1662_v61 = vmul.f32 1.442695, %v1656_v57  ;;  %v1492_v1 = vsel %vm377_vm1, %v3175_v41, 0.0  ;;  %v3177_v4 = vpop.eup %3176  ;;  %v1660_v10 = vmul.f32 1.442695, %v1655_v58  ;;  %v3085_v58 = vld [vmem:[%s4159_s23 + $0x20] sm:$0xff]  }
 0xdf1   :  { %v1653_v0 = vpop.xlane.xlu1 %1652  ;;  %1493 = vadd.xlane.f32.xlu0 %v1492_v1  ;;  %v1486_v16 = vsel %vm377_vm1, %v3177_v4, 0.0 }
 0xdf2   :  { %v1657_v5 = vsub.f32 %v1641_v43, %v1653_v0  ;;  %3182 = vpow2.f32 %v1662_v61 }
 0xdf3   :  { %v3179_v8 = vpop.eup %3178  ;;  %3184 = vpow2.f32 %v1658_v63 }
 0xdf4   :  { %v1664_v11 = vmul.f32 1.442695, %v1657_v5  ;;  %v1495_v12 = vsel %vm377_vm1, %v3179_v8, 0.0  ;;  %v3181_v15 = vpop.eup %3180 }
 0xdf5   :  { %1496 = vadd.xlane.f32.xlu1 %v1495_v12  ;;  %1487 = vadd.xlane.f32.xlu0 %v1486_v16  ;;  %v1489_v17 = vsel %vm377_vm1, %v3181_v15, 0.0 }
 0xdf6   :  { %3186 = vpow2.f32 %v1664_v11 }
 0xdf7   :  { %3188 = vpow2.f32 %v1660_v10 }
 0xdf9   :  { %1490 = vadd.xlane.f32.xlu1 %v1489_v17 }
 0xdff   :  { %v3183_v18 = vpop.eup %3182 }
 0xe00   :  { %v1672_v21 = vsel %vm377_vm1, %v3183_v18, 0.0  ;;  %v3185_v23 = vpop.eup %3184 }
 0xe01   :  { %1673 = vadd.xlane.f32.xlu0 %v1672_v21  ;;  %v1666_v26 = vsel %vm377_vm1, %v3185_v23, 0.0 }
 0xe03   :  { %v3187_v24 = vpop.eup %3186 }
 0xe04   :  { %v1675_v59 = vsel %vm377_vm1, %v3187_v24, 0.0  ;;  %v3189_v25 = vpop.eup %3188 }
 0xe05   :  { %1676 = vadd.xlane.f32.xlu1 %v1675_v59  ;;  %1667 = vadd.xlane.f32.xlu0 %v1666_v26  ;;  %v1669_v27 = vsel %vm377_vm1, %v3189_v25, 0.0 }
 0xe09   :  { %1670 = vadd.xlane.f32.xlu1 %v1669_v27 }
 0xe1a   :  { %1690 = vrot.lane.b32.xlu1 %v3924_v55, %s3483_s25 }
 0xe1b   :  { %1692 = vrot.lane.b32.xlu0 %v3920_v54, %s3483_s25  ;;  %s2517_s25 = sshll.u32 %s3487_s24, 4  ;;  %s2518_s25 = int_to_ptr.vmem [resolvable:$true] %s2517_s25 }
 0xe7a   :  { %v1494_v28 = vpop.xlane.xlu0 %1493 }
 0xe7e   :  { %v1497_v29 = vpop.xlane.xlu1 %1496  ;;  %v1488_v31 = vpop.xlane.xlu0 %1487 }
 0xe7f   :  { %3190 = vrcp.f32 %v1497_v29 }
 0xe80   :  { %3192 = vrcp.f32 %v1488_v31 }
 0xe81   :  { %3194 = vrcp.f32 %v1494_v28 }
 0xe82   :  { %v1491_v60 = vpop.xlane.xlu1 %1490 }
 0xe83   :  { %3196 = vrcp.f32 %v1491_v60 }
 0xe8a   :  { %v1674_v33 = vpop.xlane.xlu0 %1673 }
 0xe8c   :  { %v3191_v34 = vpop.eup %3190 }
 0xe8d   :  { %v3193_v35 = vpop.eup %3192  ;;  %v1505_v55 = vmul.f32 %v3191_v34, %v3179_v8 }
 0xe8e   :  { %v1677_v36 = vpop.xlane.xlu1 %1676  ;;  %v3195_v37 = vpop.eup %3194  ;;  %v1502_v40 = vmul.f32 %v3193_v35, %v3177_v4 }
 0xe8f   :  { %v1668_v38 = vpop.xlane.xlu0 %1667  ;;  %3198 = vrcp.f32 %v1677_v36  ;;  %v1504_v62 = vmul.f32 %v3195_v37, %v3175_v41 }
 0xe90   :  { %v3197_v39 = vpop.eup %3196  ;;  %3200 = vrcp.f32 %v1668_v38 }
 0xe91   :  { %v1503_v54 = vmul.f32 %v3197_v39, %v3181_v15  ;;  %3202 = vrcp.f32 %v1674_v33  ;;  %v1507_v43 = vpack.c.bf16 %v1505_v55, %v1504_v62 }
 0xe92   :  { %v1671_v19 = vpop.xlane.xlu1 %1670 }
 0xe93   :  { %3204 = vrcp.f32 %v1671_v19  ;;  %v1693_v32 = vpop.permute.xlu0 %1692  ;;  %v1506_v42 = vpack.c.bf16 %v1503_v54, %v1502_v40 }
 0xe94   :  { %2910 = vmatprep.subr.bf16.mxu0 %v1693_v32 }
 0xe95   :  { %2898 = vmatprep.mubr.msk.bf16.mxu0 %vm377_vm1, %v1506_v42 }
 0xe96   :  { %v1691_v14 = vpop.permute.xlu1 %1690  ;;  %2899 = vmatmul.mubr.msk.bf16.vlgmr.msra.gmra.mxu0 %vm377_vm1, %v1507_v43 }
 0xe97   :  { %2911 = vmatpush3.bf16.msra.mxu0 %v1693_v32 }
 0xe98   :  { %2912 = vmatprep.subr.bf16.mxu0 %v1691_v14 }
 0xe9b   :  { %2913 = vmatpush3.bf16.msra.mxu0 %v1691_v14 }
 0xe9c   :  { %v3199_v44 = vpop.eup %3198  ;;  %2918 = vmatprep.subr.bf16.mxu0 %v3082_v52 }
 0xe9d   :  { %v3201_v45 = vpop.eup %3200  ;;  %v1685_v47 = vmul.f32 %v3199_v44, %v3187_v24 }
 0xe9e   :  { %v3203_v46 = vpop.eup %3202  ;;  %v1682_v48 = vmul.f32 %v3201_v45, %v3185_v23 }
 0xe9f   :  { %v1684_v7 = vmul.f32 %v3203_v46, %v3183_v18 }
 0xea0   :  { %v3205_v20 = vpop.eup %3204 }
 0xea1   :  { %v1683_v49 = vmul.f32 %v3205_v20, %v3189_v25  ;;  %v1687_v51 = vpack.c.bf16 %v1685_v47, %v1684_v7  ;;  %v2656_v25 = vld [vmem:[%s4160_s2 + $0x1] ss:$0 sm:$0xff] }
 0xea3   :  { %v1686_v50 = vpack.c.bf16 %v1683_v49, %v1682_v48 }
 0xea5   :  { %2914 = vmatprep.mubr.msk.bf16.mxu0 %vm377_vm1, %v1686_v50 }
 0xea6   :  { %2915 = vmatmul.mubr.msk.bf16.vlgmr.msra.gmra.mxu0 %vm377_vm1, %v1687_v51  ;;  %v3086_v51 = vld [vmem:[#allocation10 + $0x38] sm:$0xff]  }
 0xea7   :  { %2919 = vmatpush3.bf16.msra.mxu0 %v3082_v52  ;;  %2930 = vmatprep.subr.bf16.mxu1 %v3086_v51  ;;  %v3087_v52 = vld [vmem:[#allocation10 + $0x30] sm:$0xff]  }
 0xea8   :  { %2920 = vmatprep.subr.bf16.mxu0 %v3083_v53  ;;  %2931 = vmatpush3.bf16.msra.mxu1 %v3086_v51 }
 0xea9   :  { %2932 = vmatprep.subr.bf16.mxu1 %v3087_v52 }
 0xeab   :  { %2921 = vmatpush3.bf16.msra.mxu0 %v3083_v53  ;;  %v3088_v53 = vld [vmem:[#allocation10 + $0x28] sm:$0xff]  }
 0xeac   :  { %2922 = vmatprep.subr.bf16.mxu0 %v3084_v22  ;;  %2933 = vmatpush3.bf16.msra.mxu1 %v3087_v52 }
 0xead   :  { %2934 = vmatprep.subr.bf16.mxu1 %v3088_v53 }
 0xeaf   :  { %2923 = vmatpush3.bf16.msra.mxu0 %v3084_v22 }
 0xeb0   :  { %2924 = vmatprep.subr.bf16.mxu0 %v3085_v58  ;;  %2935 = vmatpush3.bf16.msra.mxu1 %v3088_v53 }
 0xeb3   :  { %2925 = vmatpush3.bf16.msra.mxu0 %v3085_v58 }
 0xf56   :  { %v2900_v6 = vpop.f32.mrf.mxu0 }
 0xf58   :  { %v1550_v9 = vpop.f32.mrf.mxu0 }
 0xf5a   :  { %v2901_v56 = vpop.f32.mrf.mxu0 }
 0xf5c   :  { %v1553_v57 = vpop.f32.mrf.mxu0 }
 0xf66   :  { %v2916_v41 = vpop.f32.mrf.mxu0 }
 0xf68   :  { %v1736_v61 = vpop.f32.mrf.mxu0 }
 0xf6a   :  { %v2917_v63 = vpop.f32.mrf.mxu0 }
 0xf6b   :  { %v3037_v4 = vpack.i.bf16 %v2917_v63, %v2916_v41 }
 0xf6c   :  { %v1739_v0 = vpop.f32.mrf.mxu0 }
 0xf6d   :  { %v3032_v1 = vpack.i.bf16 %v1739_v0, %v1736_v61 }
 0xf6f   :  { %3033 = vrot.lane.b32.xlu1 %v3032_v1, %s3482_s27 }
 0xf73   :  { %3038 = vrot.lane.b32.xlu1 %v3037_v4, %s3482_s27 }
 0xfe1   :  { %v3034_v5 = vpop.permute.xlu1 %3033 }
 0xfe2   :  { %v3036_v8 = vunpack.i.h.bf16 %v3034_v5  ;;  %v3035_v10 = vunpack.i.l.bf16 %v3034_v5 }
 0xfe4   :  { %v1768_v11 = vsel %vm377_vm1, %v1553_v57, %v3036_v8  ;;  %v1767_v12 = vsel %vm377_vm1, %v1550_v9, %v3035_v10 }
 0xfe5   :  { %v1771_v15 = vpack.c.bf16 %v1768_v11, %v1767_v12  ;;  %v3039_v16 = vpop.permute.xlu1 %3038  ;;  %v2665_v11 = vld [vmem:[%s4124_s8 + $0x1] ss:$0 sm:$0xff] }
 0xfe6   :  { %v3041_v17 = vunpack.i.h.bf16 %v3039_v16  ;;  %v3040_v18 = vunpack.i.l.bf16 %v3039_v16 }
 0xfe7   :  { %2926 = vmatprep.mubr.msk.bf16.mxu0 %vm170_vm0, %v1771_v15 }
 0xfe8   :  { %v1770_v21 = vsel %vm377_vm1, %v2901_v56, %v3041_v17  ;;  %v1769_v23 = vsel %vm377_vm1, %v2900_v6, %v3040_v18  ;;  %v3089_v6 = vld [vmem:[#allocation10 + $0x20] sm:$0xff]  }
 0xfe9   :  { %v1772_v24 = vpack.c.bf16 %v1770_v21, %v1769_v23  ;;  %2936 = vmatprep.subr.bf16.mxu1 %v3089_v6  ;;  %v2666_v21 = vld [vmem:[%s4125_s9 + $0x1] ss:$0 sm:$0xff] }
 0xfea   :  { %2937 = vmatpush3.bf16.msra.mxu1 %v3089_v6 }
 0xfeb   :  { %2927 = vmatmul.mubr.msk.bf16.vlgmr.msra.gmra.mxu0 %vm170_vm0, %v1772_v24 }
0x10ab   :  { %v2928_v59 = vpop.f32.mrf.mxu0 }
0x10ac   :  { %v1863_v27 = vadd.f32 %v2928_v59, %v2656_v25 }
0x10ad   :  { %v1854_v26 = vpop.f32.mrf.mxu0 }
0x10ae   :  { %v1855_v28 = vadd.f32 %v2656_v25, %v1854_v26  ;;  %v1871_v36 = vadd.f32 %v1863_v27, %v3906_v13 }
0x10af   :  { %v2929_v29 = vpop.f32.mrf.mxu0 }
0x10b0   :  { %v1869_v31 = vadd.f32 %v1855_v28, %v3896_v2  ;;  %v1866_v33 = vadd.f32 %v2929_v29, %v2656_v25  ;;  %v1883_v39 = vsel %vm170_vm0, %v1871_v36, 0.0 }
0x10b1   :  { %v1857_v60 = vpop.f32.mrf.mxu0 }
0x10b2   :  { %v1858_v34 = vadd.f32 %v2656_v25, %v1857_v60  ;;  %v1877_v35 = vsel %vm170_vm0, %v1869_v31, 0.0  ;;  %v1872_v55 = vadd.f32 %v1866_v33, %v3904_v3 }
0x10b3   :  { %1878 = vadd.xlane.f32.xlu0 %v1877_v35  ;;  %v3091_v35 = vld [vmem:[%s4128_s12 + $0x70] sm:$0xff]  }
0x10b4   :  { %v1870_v37 = vadd.f32 %v1858_v34, %v3898_v30  ;;  %v1886_v2 = vsel %vm170_vm0, %v1872_v55, 0.0  ;;  %v3090_v34 = vld [vmem:[%s4128_s12 + $0x78] sm:$0xff]  }
0x10b5   :  { %2942 = vmatprep.subr.bf16.mxu0 %v3090_v34 }
0x10b6   :  { %v1880_v38 = vsel %vm170_vm0, %v1870_v37, 0.0  ;;  %2943 = vmatpush3.bf16.msra.mxu0 %v3090_v34 }
0x10b7   :  { %1881 = vadd.xlane.f32.xlu1 %v1880_v38  ;;  %1884 = vadd.xlane.f32.xlu0 %v1883_v39  ;;  %v3094_v38 = vld [vmem:[%s4128_s12 + $0x58] sm:$0xff]   ;;  %v3095_v39 = vld [vmem:[%s4128_s12 + $0x50] sm:$0xff]  }
0x10b8   :  { %2944 = vmatprep.subr.bf16.mxu0 %v3091_v35 }
0x10ba   :  { %2945 = vmatpush3.bf16.msra.mxu0 %v3091_v35 }
0x10bb   :  { %1887 = vadd.xlane.f32.xlu0 %v1886_v2  ;;  %v3097_v2 = vld [vmem:[%s4128_s12 + $0x40] sm:$0xff]  }
0x113c   :  { %v1879_v40 = vpop.xlane.xlu0 %1878 }
0x113d   :  { %v1889_v54 = vmul.f32 0.015625, %v1879_v40  ;;  %v2668_v40 = vld [vmem:[%s4127_s11 + $0x1] ss:$0 sm:$0xff] }
0x113f   :  { %v1893_v19 = vsub.f32 %v1869_v31, %v1889_v54 }
0x1140   :  { %v1882_v62 = vpop.xlane.xlu1 %1881  ;;  %v1885_v32 = vpop.xlane.xlu0 %1884 }
0x1141   :  { %v1890_v13 = vmul.f32 0.015625, %v1882_v62  ;;  %v1891_v42 = vmul.f32 0.015625, %v1885_v32  ;;  %v1897_v43 = vmul.f32 %v1893_v19, %v1893_v19 }
0x1143   :  { %v1894_v30 = vsub.f32 %v1870_v37, %v1890_v13  ;;  %v1895_v14 = vsub.f32 %v1871_v36, %v1891_v42  ;;  %v1901_v44 = vsel %vm170_vm0, %v1897_v43, 0.0  ;;  %v3092_v36 = vld [vmem:[%s4128_s12 + $0x68] sm:$0xff]   ;;  %v3093_v37 = vld [vmem:[%s4128_s12 + $0x60] sm:$0xff]  }
0x1144   :  { %1902 = vadd.xlane.f32.xlu0 %v1901_v44  ;;  %v1888_v45 = vpop.xlane.xlu0 %1887  ;;  %2946 = vmatprep.subr.bf16.mxu0 %v3092_v36 }
0x1145   :  { %v1892_v3 = vmul.f32 0.015625, %v1888_v45  ;;  %v1898_v46 = vmul.f32 %v1894_v30, %v1894_v30  ;;  %v1899_v20 = vmul.f32 %v1895_v14, %v1895_v14  ;;  %2947 = vmatpush3.bf16.msra.mxu0 %v3092_v36 }
0x1146   :  { %2948 = vmatprep.subr.bf16.mxu0 %v3093_v37 }
0x1147   :  { %v1896_v47 = vsub.f32 %v1872_v55, %v1892_v3  ;;  %v1904_v48 = vsel %vm170_vm0, %v1898_v46, 0.0  ;;  %v1907_v49 = vsel %vm170_vm0, %v1899_v20, 0.0  ;;  %v3096_v55 = vld [vmem:[%s4128_s12 + $0x48] sm:$0xff]  }
0x1148   :  { %1905 = vadd.xlane.f32.xlu1 %v1904_v48  ;;  %1908 = vadd.xlane.f32.xlu0 %v1907_v49 }
0x1149   :  { %v1900_v7 = vmul.f32 %v1896_v47, %v1896_v47  ;;  %2949 = vmatpush3.bf16.msra.mxu0 %v3093_v37 }
0x114a   :  { %2950 = vmatprep.subr.bf16.mxu0 %v3094_v38 }
0x114b   :  { %v1910_v50 = vsel %vm170_vm0, %v1900_v7, 0.0 }
0x114c   :  { %1911 = vadd.xlane.f32.xlu1 %v1910_v50 }
0x114d   :  { %2951 = vmatpush3.bf16.msra.mxu0 %v3094_v38 }
0x114e   :  { %2952 = vmatprep.subr.bf16.mxu0 %v3095_v39 }
0x1151   :  { %2953 = vmatpush3.bf16.msra.mxu0 %v3095_v39 }
0x1152   :  { %2954 = vmatprep.subr.bf16.mxu0 %v3096_v55 }
0x1155   :  { %2955 = vmatpush3.bf16.msra.mxu0 %v3096_v55 }
0x1156   :  { %2956 = vmatprep.subr.bf16.mxu0 %v3097_v2 }
0x1159   :  { %2957 = vmatpush3.bf16.msra.mxu0 %v3097_v2 }
0x11cd   :  { %v1903_v9 = vpop.xlane.xlu0 %1902 }
0x11ce   :  { %v1913_v56 = vmul.f32 0.015625, %v1903_v9 }
0x11d0   :  { %v1917_v22 = vadd.f32 1e-05, %v1913_v56 }
0x11d1   :  { %v1906_v57 = vpop.xlane.xlu1 %1905  ;;  %v1909_v41 = vpop.xlane.xlu0 %1908 }
0x11d2   :  { %3206 = vrsqrt.f32 %v1917_v22  ;;  %v1914_v58 = vmul.f32 0.015625, %v1906_v57  ;;  %v1915_v61 = vmul.f32 0.015625, %v1909_v41 }
0x11d4   :  { %v1918_v63 = vadd.f32 1e-05, %v1914_v58  ;;  %v1919_v0 = vadd.f32 1e-05, %v1915_v61 }
0x11d5   :  { %v1912_v1 = vpop.xlane.xlu1 %1911 }
0x11d6   :  { %3208 = vrsqrt.f32 %v1918_v63  ;;  %v1916_v4 = vmul.f32 0.015625, %v1912_v1 }
0x11d7   :  { %3210 = vrsqrt.f32 %v1919_v0 }
0x11d8   :  { %v1920_v5 = vadd.f32 1e-05, %v1916_v4 }
0x11da   :  { %3212 = vrsqrt.f32 %v1920_v5 }
0x11df   :  { %v3207_v8 = vpop.eup %3206 }
0x11e0   :  { %v1925_v10 = vmul.f32 %v3207_v8, %v1893_v19 }
0x11e2   :  { %v1935_v17 = vmul.f32 %v2665_v11, %v1925_v10 }
0x11e3   :  { %v3209_v12 = vpop.eup %3208 }
0x11e4   :  { %v3211_v15 = vpop.eup %3210  ;;  %v1926_v16 = vmul.f32 %v3209_v12, %v1894_v30  ;;  %v4010_v25 = vadd.f32 %v2666_v21, %v1935_v17 }
0x11e5   :  { %v1927_v18 = vmul.f32 %v3211_v15, %v1895_v14 }
0x11e6   :  { %v1936_v23 = vmul.f32 %v2665_v11, %v1926_v16 }
0x11e7   :  { %v3213_v24 = vpop.eup %3212  ;;  %v1937_v27 = vmul.f32 %v2665_v11, %v1927_v18 }
0x11e8   :  { %v1928_v59 = vmul.f32 %v3213_v24, %v1896_v47  ;;  %v4012_v26 = vadd.f32 %v2666_v21, %v1936_v23 }
0x11e9   :  { %v4017_v31 = vadd.f32 %v2666_v21, %v1937_v27 }
0x11ea   :  { %v1949_v28 = vpack.c.bf16 %v4012_v26, %v4010_v25  ;;  %v1938_v29 = vmul.f32 %v2665_v11, %v1928_v59  ;;  %v2692_v59 = vld [vmem:[%s4129_s13 + $0x1] ss:$0 sm:$0xff] }
0x11ec   :  { %2938 = vmatprep.mubr.msk.bf16.mxu1 %vm170_vm0, %v1949_v28  ;;  %v4019_v60 = vadd.f32 %v2666_v21, %v1938_v29 }
0x11ee   :  { %v1950_v33 = vpack.c.bf16 %v4019_v60, %v4017_v31 }
0x11f0   :  { %2939 = vmatmul.mubr.msk.bf16.vlgmr.msra.gmra.mxu1 %vm170_vm0, %v1950_v33 }
0x12b0   :  { %v2940_v54 = vpop.f32.mrf.mxu1 }
0x12b1   :  { %v2041_v19 = vadd.f32 %v2940_v54, %v2668_v40 }
0x12b2   :  { %v2032_v62 = vpop.f32.mrf.mxu1 }
0x12b3   :  { %v2049_v32 = vmul.f32 %v2041_v19, %v2041_v19  ;;  %v2033_v13 = vadd.f32 %v2668_v40, %v2032_v62 }
0x12b4   :  { %v2941_v42 = vpop.f32.mrf.mxu1 }
0x12b5   :  { %v2053_v43 = vmul.f32 %v2049_v32, %v2041_v19  ;;  %v2047_v30 = vmul.f32 %v2033_v13, %v2033_v13  ;;  %v2044_v14 = vadd.f32 %v2941_v42, %v2668_v40 }
0x12b6   :  { %v2035_v44 = vpop.f32.mrf.mxu1 }
0x12b7   :  { %v2057_v45 = vmul.f32 0.044715, %v2053_v43  ;;  %v2051_v3 = vmul.f32 %v2047_v30, %v2033_v13  ;;  %v2050_v46 = vmul.f32 %v2044_v14, %v2044_v14  ;;  %v2036_v20 = vadd.f32 %v2668_v40, %v2035_v44 }
0x12b9   :  { %v2061_v47 = vadd.f32 %v2057_v45, %v2041_v19  ;;  %v2055_v48 = vmul.f32 0.044715, %v2051_v3  ;;  %v2054_v49 = vmul.f32 %v2050_v46, %v2044_v14  ;;  %v2048_v7 = vmul.f32 %v2036_v20, %v2036_v20 }
0x12bb   :  { %v2065_v50 = vmul.f32 0.7978846, %v2061_v47  ;;  %v2059_v51 = vadd.f32 %v2055_v48, %v2033_v13  ;;  %v2058_v52 = vmul.f32 0.044715, %v2054_v49  ;;  %v2052_v53 = vmul.f32 %v2048_v7, %v2036_v20 }
0x12bd   :  { %v2063_v6 = vmul.f32 0.7978846, %v2059_v51  ;;  %v2062_v9 = vadd.f32 %v2058_v52, %v2044_v14  ;;  %v2056_v56 = vmul.f32 0.044715, %v2052_v53  ;;  %3214 = vtanh.f32 %v2065_v50  ;;  %v3098_v51 = vld [vmem:[#allocation11 + $0x18] sm:$0xff]   ;;  %v3099_v53 = vld [vmem:[#allocation11 + $0x10] sm:$0xff]  }
0x12be   :  { %v3484_v52 = vmov 0.0  }
0x12bf   :  { %3216 = vtanh.f32 %v2063_v6  ;;  %v2066_v22 = vmul.f32 0.7978846, %v2062_v9  ;;  %v2060_v57 = vadd.f32 %v2056_v56, %v2036_v20  ;;  %2962 = vmatprep.subr.bf16.mxu1 %v3484_v52  ;;  %v3100_v6 = vld [vmem:[#allocation11 + $0x8] sm:$0xff]   ;;  %v3101_v9 = vld [vmem:[#allocation11] sm:$0xff]   ;;  %2970 = vmatprep.mubr.msk.bf16.mxu1 %vm3485_vm2, %v3484_v52 }
0x12c0   :  { %2963 = vmatpush3.bf16.msra.mxu1 %v3098_v51 }
0x12c1   :  { %3218 = vtanh.f32 %v2066_v22  ;;  %v2064_v41 = vmul.f32 0.7978846, %v2060_v57  ;;  %2964 = vmatprep.subr.bf16.mxu1 %v3484_v52 }
0x12c3   :  { %3220 = vtanh.f32 %v2064_v41 }
0x12c4   :  { %2965 = vmatpush3.bf16.msra.mxu1 %v3099_v53 }
0x12c5   :  { %2966 = vmatprep.subr.bf16.mxu1 %v3484_v52 }
0x12c8   :  { %2967 = vmatpush3.bf16.msra.mxu1 %v3100_v6 }
0x12c9   :  { %2968 = vmatprep.subr.bf16.mxu1 %v3484_v52 }
0x12ca   :  { %v3215_v58 = vpop.eup %3214 }
0x12cb   :  { %v2073_v1 = vadd.f32 1.0, %v3215_v58 }
0x12cc   :  { %v3217_v61 = vpop.eup %3216  ;;  %2969 = vmatpush3.bf16.msra.mxu1 %v3101_v9 }
0x12cd   :  { %v2071_v63 = vadd.f32 1.0, %v3217_v61  ;;  %v2077_v12 = vmul.f32 0.5, %v2073_v1  ;;  %2974 = vmatprep.subr.bf16.mxu1 %v3484_v52 }
0x12ce   :  { %v3219_v0 = vpop.eup %3218 }
0x12cf   :  { %v2074_v4 = vadd.f32 1.0, %v3219_v0  ;;  %v2075_v11 = vmul.f32 0.5, %v2071_v63  ;;  %v2081_v21 = vmul.f32 %v2077_v12, %v2041_v19 }
0x12d0   :  { %v3221_v5 = vpop.eup %3220 }
0x12d1   :  { %v2078_v8 = vmul.f32 0.5, %v2074_v4  ;;  %v2072_v10 = vadd.f32 1.0, %v3221_v5  ;;  %v2079_v17 = vmul.f32 %v2075_v11, %v2033_v13  ;;  %v2703_v11 = vld [vmem:[%s4130_s14 + $0x1] ss:$0 sm:$0xff] }
0x12d3   :  { %v2076_v15 = vmul.f32 0.5, %v2072_v10  ;;  %v2082_v16 = vmul.f32 %v2078_v8, %v2044_v14 }
0x12d5   :  { %v2080_v18 = vmul.f32 %v2076_v15, %v2036_v20  ;;  %v2084_v24 = vpack.c.bf16 %v2082_v16, %v2081_v21  ;;  %v2704_v15 = vld [vmem:[%s4131_s15 + $0x1] ss:$0 sm:$0xff] }
0x12d7   :  { %v2083_v23 = vpack.c.bf16 %v2080_v18, %v2079_v17 }
0x12d9   :  { %2958 = vmatprep.mubr.bf16.mxu0 %v2083_v23 }
0x12da   :  { %2959 = vmatmul.mubr.bf16.vlgmr.msra.gmra.mxu0 %v2084_v24 }
0x139a   :  { %v2960_v27 = vpop.f32.mrf.mxu0 }
0x139b   :  { %v2201_v28 = vadd.f32 %v2960_v27, %v2692_v59 }
0x139c   :  { %v2192_v29 = vpop.f32.mrf.mxu0 }
0x139d   :  { %v2209_v33 = vadd.f32 %v2201_v28, %v4017_v31  ;;  %v2193_v38 = vadd.f32 %v2692_v59, %v2192_v29 }
0x139e   :  { %v2961_v34 = vpop.f32.mrf.mxu0 }
0x139f   :  { %v2204_v35 = vadd.f32 %v2961_v34, %v2692_v59  ;;  %v2221_v36 = vsel %vm170_vm0, %v2209_v33, 0.0  ;;  %v2207_v19 = vadd.f32 %v2193_v38, %v4010_v25 }
0x13a0   :  { %2222 = vadd.xlane.f32.xlu1 %v2221_v36  ;;  %v2195_v37 = vpop.f32.mrf.mxu0 }
0x13a1   :  { %v2196_v39 = vadd.f32 %v2692_v59, %v2195_v37  ;;  %v2210_v55 = vadd.f32 %v2204_v35, %v4019_v60  ;;  %v2215_v31 = vsel %vm170_vm0, %v2207_v19, 0.0 }
0x13a3   :  { %v2224_v2 = vsel %vm170_vm0, %v2210_v55, 0.0  ;;  %v2208_v40 = vadd.f32 %v2196_v39, %v4012_v26 }
0x13a4   :  { %2225 = vadd.xlane.f32.xlu1 %v2224_v2 }
0x13a5   :  { %v2218_v54 = vsel %vm170_vm0, %v2208_v40, 0.0 }
0x13a6   :  { %2219 = vadd.xlane.f32.xlu0 %v2218_v54 }
0x13aa   :  { %2216 = vadd.xlane.f32.xlu0 %v2215_v31  ;;  %v3103_v31 = vld [vmem:[#allocation13 + $0x30] sm:$0xff]  }
0x1429   :  { %v2223_v62 = vpop.xlane.xlu1 %2222 }
0x142a   :  { %v2229_v32 = vmul.f32 0.015625, %v2223_v62  ;;  %v3104_v62 = vld [vmem:[#allocation13 + $0x28] sm:$0xff]  }
0x142c   :  { %v2233_v13 = vsub.f32 %v2209_v33, %v2229_v32  ;;  %v3105_v32 = vld [vmem:[#allocation13 + $0x20] sm:$0xff]  }
0x142d   :  { %v2226_v42 = vpop.xlane.xlu1 %2225 }
0x142e   :  { %v2230_v43 = vmul.f32 0.015625, %v2226_v42  ;;  %v2237_v30 = vmul.f32 %v2233_v13, %v2233_v13  ;;  %v3107_v42 = vld [vmem:[#allocation13 + $0x10] sm:$0xff]  }
0x142f   :  { %v2220_v60 = vpop.xlane.xlu0 %2219 }
0x1430   :  { %v2234_v14 = vsub.f32 %v2210_v55, %v2230_v43  ;;  %v2228_v44 = vmul.f32 0.015625, %v2220_v60  ;;  %v2245_v26 = vsel %vm170_vm0, %v2237_v30, 0.0  ;;  %v3108_v43 = vld [vmem:[#allocation13 + $0x8] sm:$0xff]   ;;  %v2705_v30 = vld [vmem:[%s4133_s17] ss:$0 sm:$0xff]  ;;  %s3486_s17 = smov [#allocation15]  }
0x1431   :  { %2246 = vadd.xlane.f32.xlu1 %v2245_v26  ;;  %s2530_s0 = sshll.u32 %s3486_s17, 4  ;;  %s2531_s0 = int_to_ptr.vmem [resolvable:$true] %s2530_s0 }
0x1432   :  { %v2232_v45 = vsub.f32 %v2208_v40, %v2228_v44  ;;  %v2238_v3 = vmul.f32 %v2234_v14, %v2234_v14  ;;  %s3376_s5 = scalar_lea.vmem %s2531_s0, 64  ;;  %p3381_p8 = scmp.lt.s32.totalorder %s2531_s0, %s2531_s0 }
0x1433   :  { %v2217_v46 = vpop.xlane.xlu0 %2216  ;;  %p3377_p7 = scmp.ne.s32.totalorder %s2531_s0, %s3376_s5  ;;  %p3382_p9 = scmp.lt.s32.totalorder %s3376_s5, %s3376_s5 }
0x1434   :  { %v2227_v25 = vmul.f32 0.015625, %v2217_v46  ;;  %v2248_v20 = vsel %vm170_vm0, %v2238_v3, 0.0  ;;  %v2236_v47 = vmul.f32 %v2232_v45, %v2232_v45 }
0x1435   :  { %2249 = vadd.xlane.f32.xlu1 %v2248_v20  ;;  %p3383_p10 = por %p3382_p9, %p3381_p8 }
0x1436   :  { %v2231_v48 = vsub.f32 %v2207_v19, %v2227_v25  ;;  %v2242_v49 = vsel %vm170_vm0, %v2236_v47, 0.0  ;;  %v3102_v19 = vld [vmem:[#allocation13 + $0x38] sm:$0xff]  }
0x1437   :  { %2243 = vadd.xlane.f32.xlu0 %v2242_v49  ;;  %p3384_p11 = pnand %p3383_p10, %p3377_p7 }
0x1438   :  { %v2235_v7 = vmul.f32 %v2231_v48, %v2231_v48 }
0x143a   :  { %v2239_v50 = vsel %vm170_vm0, %v2235_v7, 0.0 }
0x143b   :  { %2240 = vadd.xlane.f32.xlu0 %v2239_v50 }
0x14ba   :  { %v2247_v56 = vpop.xlane.xlu1 %2246 }
0x14bb   :  { %v2253_v22 = vmul.f32 0.015625, %v2247_v56 }
0x14bd   :  { %v2257_v57 = vadd.f32 1e-05, %v2253_v22 }
0x14be   :  { %v2250_v41 = vpop.xlane.xlu1 %2249 }
0x14bf   :  { %3222 = vrsqrt.f32 %v2257_v57  ;;  %v2254_v58 = vmul.f32 0.015625, %v2250_v41 }
0x14c0   :  { %v2244_v61 = vpop.xlane.xlu0 %2243 }
0x14c1   :  { %v2258_v63 = vadd.f32 1e-05, %v2254_v58  ;;  %v2252_v0 = vmul.f32 0.015625, %v2244_v61 }
0x14c3   :  { %3224 = vrsqrt.f32 %v2258_v63  ;;  %v2256_v1 = vadd.f32 1e-05, %v2252_v0 }
0x14c4   :  { %v2241_v4 = vpop.xlane.xlu0 %2240 }
0x14c5   :  { %3226 = vrsqrt.f32 %v2256_v1  ;;  %v2251_v5 = vmul.f32 0.015625, %v2241_v4 }
0x14c7   :  { %v2255_v8 = vadd.f32 1e-05, %v2251_v5 }
0x14c9   :  { %3228 = vrsqrt.f32 %v2255_v8 }
0x14cc   :  { %v3223_v10 = vpop.eup %3222 }
0x14cd   :  { %v2265_v12 = vmul.f32 %v3223_v10, %v2233_v13  ;;  %v3106_v13 = vld [vmem:[#allocation13 + $0x18] sm:$0xff]  }
0x14cf   :  { %v2275_v16 = vmul.f32 %v2703_v11, %v2265_v12 }
0x14d0   :  { %v3225_v17 = vpop.eup %3224 }
0x14d1   :  { %v2285_v18 = vadd.f32 %v2704_v15, %v2275_v16  ;;  %v2266_v21 = vmul.f32 %v3225_v17, %v2234_v14 }
0x14d2   :  { %v3227_v23 = vpop.eup %3226 }
0x14d3   :  { %2289 = vst.msk [vmem:[#allocation14 + $0x10] sm:$0xff] %vm170_vm0, %v2285_v18  ;;  %v2276_v24 = vmul.f32 %v2703_v11, %v2266_v21  ;;  %v2264_v59 = vmul.f32 %v3227_v23, %v2232_v45  ;;  %v2295_v38 = vrot.slane %v2285_v18, 6  ;;  %v3109_v45 = vld [vmem:[#allocation13] sm:$0xff]  }
0x14d5   :  { %v2274_v27 = vmul.f32 %v2703_v11, %v2264_v59  ;;  %v2286_v28 = vadd.f32 %v2704_v15, %v2276_v24 }
0x14d6   :  { %v3229_v29 = vpop.eup %3228 }
0x14d7   :  { %v2284_v33 = vadd.f32 %v2704_v15, %v2274_v27  ;;  %v2263_v34 = vmul.f32 %v3229_v29, %v2231_v48  ;;  %2290 = vst.msk [vmem:[#allocation14 + $0x18] sm:$0xff] %vm170_vm0, %v2286_v28  ;;  %v2298_v39 = vrot.slane %v2286_v28, 5 }
0x14d9   :  { %2288 = vst.msk [vmem:[#allocation14 + $0x8] sm:$0xff] %vm170_vm0, %v2284_v33  ;;  %v2273_v35 = vmul.f32 %v2703_v11, %v2263_v34  ;;  %v2292_v37 = vrot.slane %v2284_v33, 7 }
0x14db   :  { %v2283_v36 = vadd.f32 %v2704_v15, %v2273_v35 }
0x14dd   :  { %2287 = vst.msk [vmem:[#allocation14] sm:$0xff] %vm170_vm0, %v2283_v36  ;;  %v2301_v55 = vsel %vm2300_vm3, %v2283_v36, %v2292_v37 }
0x14de   :  { %v2303_v2 = vsel %vm2302_vm4, %v2301_v55, %v2295_v38 }
0x14df   :  { %v2305_v40 = vsel %vm2304_vm5, %v2303_v2, %v2298_v39 }
0x14e0   :  { %v2306_v54 = vpack.c.bf16 %v2305_v40, %v2305_v40 }
0x14e2   :  { %2971 = vmatmul.mubr.msk.bf16.vlgmr.msra.gmra.mxu1 %vm170_vm0, %v2306_v54 }
0x14e3   :  { %2990 = vmatprep.mubr.msk.bf16.mxu1 %vm3485_vm2, %v3484_v52  ;;  %2975 = vmatpush3.bf16.msra.mxu1 %v3102_v19 }
0x14e4   :  { %2976 = vmatprep.subr.bf16.mxu1 %v3484_v52 }
0x14e7   :  { %2977 = vmatpush3.bf16.msra.mxu1 %v3103_v31 }
0x14e8   :  { %2978 = vmatprep.subr.bf16.mxu1 %v3484_v52 }
0x14eb   :  { %2979 = vmatpush3.bf16.msra.mxu1 %v3104_v62 }
0x14ec   :  { %2980 = vmatprep.subr.bf16.mxu1 %v3484_v52 }
0x14ef   :  { %2981 = vmatpush3.bf16.msra.mxu1 %v3105_v32 }
0x14f0   :  { %2982 = vmatprep.subr.bf16.mxu1 %v3484_v52 }
0x14f3   :  { %2983 = vmatpush3.bf16.msra.mxu1 %v3106_v13 }
0x14f4   :  { %2984 = vmatprep.subr.bf16.mxu1 %v3484_v52 }
0x14f7   :  { %2985 = vmatpush3.bf16.msra.mxu1 %v3107_v42 }
0x14f8   :  { %2986 = vmatprep.subr.bf16.mxu1 %v3484_v52 }
0x14fb   :  { %2987 = vmatpush3.bf16.msra.mxu1 %v3108_v43 }
0x14fc   :  { %2988 = vmatprep.subr.bf16.mxu1 %v3484_v52 }
0x14ff   :  { %2989 = vmatpush3.bf16.msra.mxu1 %v3109_v45 }
0x15a2   :  { %v2383_v60 = vpop.f32.mrf.mxu1 }
0x15a3   :  { %v2384_v14 = vadd.f32 %v2705_v30, %v2383_v60 }
0x15a4   :  { %v2972_v44 = vpop.f32.mrf.mxu1 }
0x15a5   :  { %3230 = vtanh.f32 %v2384_v14 }
0x15a6   :  { %v2386_v26 = vpop.f32.mrf.mxu1 }
0x15a8   :  { %v2973_v3 = vpop.f32.mrf.mxu1 }
0x15b2   :  { %v3231_v46 = vpop.eup %3230 }
0x15b3   :  { %v2393_v25 = vrot.slane %v3231_v46, 2  ;;  %2391 = vst.msk [vmem:[#allocation15] sm:$0xf] %vm2390_vm6, %v3231_v46 }
0x15b5   :  { %2394 = vrot.lane.b32.xlu0 %v2393_v25, %s3476_s30 }
0x1627   :  { %v2395_v20 = vpop.permute.xlu0 %2394 }
0x1628   :  { %v2397_v47 = vsel %vm170_vm0, %v3231_v46, %v2395_v20 }
0x1629   :  { %2398 = vst [vmem:[#allocation17] sm:$0x3] %v2397_v47  ;;  %v2399_v48 = vpack.c.bf16 %v2397_v47, %v2397_v47 }
0x162b   :  { %2991 = vmatmul.mubr.bf16.vlgmr.msra.gmra.mxu1 %v2399_v48 }
0x162c   :  { %3387 = shalt.err (!%p3384_p11)
}
0x162d   :  { %2533 = dma.vmem_to_hbm [thread:$0]  %s2531_s0, 64, %s4137_s21, [#allocation16]  }
0x162e   :  { %s3396_s16 = scalar_lea.vmem %s2518_s25, 512  ;;  %p3401_p13 = scmp.lt.s32.totalorder %s2518_s25, %s2518_s25 }
0x162f   :  { %p3397_p12 = scmp.ne.s32.totalorder %s2518_s25, %s3396_s16  ;;  %p3402_p0 = scmp.lt.s32.totalorder %s3396_s16, %s3396_s16 }
0x1631   :  { %p3403_p1 = por %p3402_p0, %p3401_p13 }
0x1633   :  { %p3404_p2 = pnand %p3403_p1, %p3397_p12 }
0x1635   :  { %3407 = shalt.err (!%p3404_p2)
}
0x1636   :  { %2523 = dma.vmem_to_hbm [thread:$0]  %s2518_s25, 512, %s4136_s20, [#allocation4], %s3472_s1, %s3472_s1, %s3473_s26  }
0x1637   :  { %s3488_s6 = smov [#allocation17]  }
0x1638   :  { %s2540_s27 = sshll.u32 %s3488_s6, 4  ;;  %s2541_s27 = int_to_ptr.vmem [resolvable:$true] %s2540_s27 }
0x1639   :  { %s3416_s23 = scalar_lea.vmem %s2541_s27, 32  ;;  %p3421_p4 = scmp.lt.s32.totalorder %s2541_s27, %s2541_s27 }
0x163a   :  { %p3417_p3 = scmp.ne.s32.totalorder %s2541_s27, %s3416_s23  ;;  %p3422_p5 = scmp.lt.s32.totalorder %s3416_s23, %s3416_s23 }
0x163c   :  { %p3423_p6 = por %p3422_p5, %p3421_p4 }
0x163e   :  { %p3424_p7 = pnand %p3423_p6, %p3417_p3 }
0x1640   :  { %3427 = shalt.err (!%p3424_p7)
}
0x1641   :  { %2543 = dma.vmem_to_hbm [thread:$0]  %s2541_s27, 32, %s4138_s22, [#allocation16]   ;;  %v2711_v49 = vld [vmem:[%s4135_s19] ss:$0 sm:$0xff] }
0x1642   :  { %s3489_s29 = smov [#allocation18]  }
0x1643   :  { %s2550_s20 = sshll.u32 %s3489_s29, 4  ;;  %s2551_s20 = int_to_ptr.vmem [resolvable:$true] %s2550_s20 }
0x1644   :  { %s3436_s1 = scalar_lea.vmem %s2551_s20, 32  ;;  %p3441_p9 = scmp.lt.s32.totalorder %s2551_s20, %s2551_s20 }
0x1645   :  { %p3437_p8 = scmp.ne.s32.totalorder %s2551_s20, %s3436_s1  ;;  %p3442_p10 = scmp.lt.s32.totalorder %s3436_s1, %s3436_s1 }
0x1647   :  { %p3443_p11 = por %p3442_p10, %p3441_p9 }
0x1649   :  { %p3444_p12 = pnand %p3443_p11, %p3437_p8 }
0x16eb   :  { %v2505_v7 = vpop.f32.mrf.mxu1 }
0x16ec   :  { %v2506_v50 = vadd.f32 %v2711_v49, %v2505_v7 }
0x16ed   :  { %v2992_v51 = vpop.f32.mrf.mxu1 }
0x16ee   :  { %2511 = vst [vmem:[#allocation18] sm:$0x3] %v2506_v50 }
0x16ef   :  { %v2508_v52 = vpop.f32.mrf.mxu1 }
0x16f0   :  { %3447 = shalt.err (!%p3444_p12)
}
0x16f1   :  { %s4161_s11 = sld [smem:[#allocation35_spill]]  ;;  %v2993_v53 = vpop.f32.mrf.mxu1 }
0x16f7   :  { %2553 = dma.vmem_to_hbm [thread:$0]  %s2551_s20, 32, %s4161_s11, [#allocation19]  }
0x16f8   :  { %3464 = dma.done.wait [#allocation4], 512  }
0x16f9   :  { %3465 = vsyncadd [#allocation4], 4294966784 }
0x16fa   :  { %3466 = dma.done.wait [#allocation16], 96  }
0x16fb   :  { %3467 = vsyncadd [#allocation16], 4294967200 }
0x16fc   :  { %3468 = dma.done.wait [#allocation19], 32  }
0x16fd   :  { %3469 = vsyncadd [#allocation19], 4294967264 }
0x16fe   :  { %2566 = vsyncpa [#allocation3], 1 }
0x16ff   :  { %2567 = vsyncpa [#allocation6], 1 }
0x1700   :  { %2568 = vsyncpa [#allocation9], 1 }
0x1701   :  { %2569 = vsyncpa [#allocation12], 1 }
0x1702   :  { %2570 = vsyncpa [#allocation4], 1 }
0x1703   :  { %2571 = vsyncpa [#allocation16], 1 }
0x1704   :  { %2572 = vsyncpa [#allocation19], 1 }

</bundles_post_ra>
